<compile_context>
chip_gen: v7x
topology: tpu7x:2x2x1
jax: 0.10.0
libtpu: 0.0.40
codegen_flags: <defaults>
</compile_context>

<pallas_src>
import functools
import math

import jax
import jax.numpy as jnp
from jax.experimental import pallas as pl
from jax.experimental.pallas import tpu as pltpu


_LN_EPS = 1e-5  # torch.nn.LayerNorm default


# ---------------------------------------------------------------------------
# In-kernel math helpers (f32)
# ---------------------------------------------------------------------------

def _ln(x, g, b, eps):
    mu = jnp.mean(x, axis=-1, keepdims=True)
    var = jnp.mean(jnp.square(x - mu), axis=-1, keepdims=True)
    return (x - mu) * jax.lax.rsqrt(var + eps) * g + b


def _gelu_exact(x):
    # exact GELU (erf form), matching torch.nn.GELU default
    return 0.5 * x * (1.0 + jax.lax.erf(x * (1.0 / math.sqrt(2.0))))


# ---------------------------------------------------------------------------
# Fused whole-model kernel (one grid step == one batch element)
# ---------------------------------------------------------------------------

def _spatial_kernel(x_ref, embw_ref, embb_ref,
                    ln1g_ref, ln1b_ref, wq_ref, wk_ref, wv_ref,
                    projw_ref, projb_ref,
                    ln2g_ref, ln2b_ref, fc1w_ref, fc1b_ref, fc2w_ref, fc2b_ref,
                    normg_ref, normb_ref, depw_ref, depb_ref,
                    o_ref, *, depth, num_heads, eps):
    # ---- patch embedding: tokens = patches @ Wemb + bemb ----
    xp = x_ref[0].astype(jnp.float32)                                # (N, Pd)
    tok0 = (jnp.dot(xp, embw_ref[...].astype(jnp.float32),
                    preferred_element_type=jnp.float32)
            + embb_ref[...].astype(jnp.float32))                     # (N, D)
    n_tok, dim = tok0.shape
    hd = dim // num_heads
    scale = float(hd) ** -0.5

    def one_block(d, t):
        # ---- attention branch: t + proj(MHA(LN1(t))) ----
        h = _ln(t, ln1g_ref[d].astype(jnp.float32),
                ln1b_ref[d].astype(jnp.float32), eps)                # (N, D)
        hb = jnp.broadcast_to(h, (num_heads, n_tok, dim))            # (H, N, D)
        q = jnp.einsum('hnd,hde->hne', hb, wq_ref[d].astype(jnp.float32),
                       preferred_element_type=jnp.float32)           # (H, N, hd)
        k = jnp.einsum('hnd,hde->hne', hb, wk_ref[d].astype(jnp.float32),
                       preferred_element_type=jnp.float32)
        v = jnp.einsum('hnd,hde->hne', hb, wv_ref[d].astype(jnp.float32),
                       preferred_element_type=jnp.float32)

        s = jnp.einsum('hne,hme->hnm', q, k,
                       preferred_element_type=jnp.float32) * scale   # (H, N, N)
        s = s - jnp.max(s, axis=-1, keepdims=True)
        p = jnp.exp(s)
        p = p * pl.reciprocal(jnp.sum(p, axis=-1, keepdims=True), approx=True)
        o = jnp.einsum('hnm,hme->hne', p, v,
                       preferred_element_type=jnp.float32)           # (H, N, hd)

        # concat heads -> (N, D), then ONE K=D output-projection matmul
        o_cat = jnp.concatenate([o[i] for i in range(num_heads)], axis=-1)
        t = (t
             + jnp.dot(o_cat, projw_ref[d].astype(jnp.float32),
                       preferred_element_type=jnp.float32)
             + projb_ref[d].astype(jnp.float32))

        # ---- MLP branch: t + fc2(gelu(fc1(LN2(t)))) ----
        h2 = _ln(t, ln2g_ref[d].astype(jnp.float32),
                 ln2b_ref[d].astype(jnp.float32), eps)
        h2 = (jnp.dot(h2, fc1w_ref[d].astype(jnp.float32),
                      preferred_element_type=jnp.float32)
              + fc1b_ref[d].astype(jnp.float32))
        h2 = _gelu_exact(h2)
        h2 = (jnp.dot(h2, fc2w_ref[d].astype(jnp.float32),
                      preferred_element_type=jnp.float32)
              + fc2b_ref[d].astype(jnp.float32))
        return t + h2

    tok = jax.lax.fori_loop(0, depth, one_block, tok0)

    # ---- final LayerNorm fused with depatch Linear(embed_dim -> p*p) ----
    y = _ln(tok, normg_ref[...].astype(jnp.float32),
            normb_ref[...].astype(jnp.float32), eps)
    y = (jnp.dot(y, depw_ref[...].astype(jnp.float32),
                 preferred_element_type=jnp.float32)
         + depb_ref[...].astype(jnp.float32))                        # (N, p*p)
    o_ref[0] = y.astype(o_ref.dtype)


# ---------------------------------------------------------------------------
# Module forward (reshapes / transposes are pure index shuffles on HBM)
# ---------------------------------------------------------------------------

@functools.partial(jax.jit, static_argnames=("patch_size", "num_heads"))
def spatial_forward(x, params, *, patch_size, num_heads):
    B, C, H, W = x.shape
    p = patch_size
    if H % p != 0 or W % p != 0:
        raise ValueError(
            f"input image size ({H}*{W}) cannot be evenly divided by the "
            f"patch size ({p}*{p})")
    h_, w_ = H // p, W // p
    N = h_ * w_
    patch_dim = p * p * C
    pp = p * p
    D = params["emb_w"].shape[1]
    hd = D // num_heads
    blocks = params["blocks"]
    depth = len(blocks)
    hidden = blocks[0]["fc1_w"].shape[1]

    # embedding rearrange: 'b c (h p1) (w p2) -> b (h w) (p1 p2 c)'
    xt = (x.reshape(B, C, h_, p, w_, p)
           .transpose(0, 2, 4, 3, 5, 1)
           .reshape(B, N, patch_dim))

    # ---- stack per-block weights along a leading depth axis ----
    def stack(name):
        return jnp.stack([bp[name] for bp in blocks])

    # qkv columns are ordered (3, num_heads, hd) exactly as torch's
    # reshape(B, N, 3, num_heads, hd); re-pack head-major per projection.
    qkv = stack("qkv_w").reshape(depth, D, 3, num_heads, hd)
    wq = qkv[:, :, 0].transpose(0, 2, 1, 3)            # (depth, H, D, hd)
    wk = qkv[:, :, 1].transpose(0, 2, 1, 3)
    wv = qkv[:, :, 2].transpose(0, 2, 1, 3)

    ln1g = stack("ln1_g").reshape(depth, 1, D)
    ln1b = stack("ln1_b").reshape(depth, 1, D)
    projw = stack("proj_w")                            # (depth, D, D)
    projb = stack("proj_b").reshape(depth, 1, D)
    ln2g = stack("ln2_g").reshape(depth, 1, D)
    ln2b = stack("ln2_b").reshape(depth, 1, D)
    fc1w = stack("fc1_w")                              # (depth, D, hidden)
    fc1b = stack("fc1_b").reshape(depth, 1, hidden)
    fc2w = stack("fc2_w")                              # (depth, hidden, D)
    fc2b = stack("fc2_b").reshape(depth, 1, D)

    emb_w = params["emb_w"]
    emb_b = params["emb_b"].reshape(1, D)
    normg = params["norm_g"].reshape(1, D)
    normb = params["norm_b"].reshape(1, D)
    depw = params["dep_w"]
    depb = params["dep_b"].reshape(1, pp)

    weights = [emb_w, emb_b, ln1g, ln1b, wq, wk, wv, projw, projb,
               ln2g, ln2b, fc1w, fc1b, fc2w, fc2b, normg, normb, depw, depb]

    # VMEM budget from the actual footprint (double-buffered blocks + f32
    # in-kernel temporaries), capped at 64 MiB for v7x portability.
    w_bytes = sum(int(a.size) * a.dtype.itemsize for a in weights)
    io_bytes = (N * patch_dim + N * pp) * 4
    tmp_bytes = 4 * N * (10 * D + 2 * hidden + 3 * num_heads * N
                         + patch_dim + pp)
    vmem_limit = int(min(max(2 * (w_bytes + io_bytes) + tmp_bytes + (2 << 20),
                             16 << 20),
                         64 << 20))

    def const(shape):
        zeros = (0,) * len(shape)
        return pl.BlockSpec(shape, lambda b, _z=zeros: _z)

    tok_out = pl.pallas_call(
        functools.partial(_spatial_kernel, depth=depth,
                          num_heads=num_heads, eps=_LN_EPS),
        out_shape=jax.ShapeDtypeStruct((B, N, pp), x.dtype),
        grid=(B,),
        in_specs=[
            pl.BlockSpec((1, N, patch_dim), lambda b: (b, 0, 0)),   # tokens
            const((patch_dim, D)), const((1, D)),                   # embedding
            const((depth, 1, D)), const((depth, 1, D)),             # ln1
            const((depth, num_heads, D, hd)),                       # Wq
            const((depth, num_heads, D, hd)),                       # Wk
            const((depth, num_heads, D, hd)),                       # Wv
            const((depth, D, D)), const((depth, 1, D)),             # proj
            const((depth, 1, D)), const((depth, 1, D)),             # ln2
            const((depth, D, hidden)), const((depth, 1, hidden)),   # fc1
            const((depth, hidden, D)), const((depth, 1, D)),        # fc2
            const((1, D)), const((1, D)),                           # final norm
            const((D, pp)), const((1, pp)),                         # depatch
        ],
        out_specs=pl.BlockSpec((1, N, pp), lambda b: (b, 0, 0)),
        compiler_params=pltpu.CompilerParams(
            dimension_semantics=("parallel",),
            vmem_limit_bytes=vmem_limit),
    )(xt, *weights)

    # depatch rearrange: 'b (h w) (p1 p2 c) -> b c (h p1) (w p2)'  (c = 1)
    y = tok_out.reshape(B, h_, w_, p, p, 1).transpose(0, 5, 1, 3, 2, 4)
    return y.reshape(B, 1, h_ * p, w_ * p)


# ---------------------------------------------------------------------------
# Pure-JAX reference (mirrors the PyTorch module op-for-op)
# ---------------------------------------------------------------------------

def _ref_ln(x, g, b, eps=_LN_EPS):
    mu = jnp.mean(x, axis=-1, keepdims=True)
    var = jnp.mean(jnp.square(x - mu), axis=-1, keepdims=True)
    return (x - mu) * jax.lax.rsqrt(var + eps) * g + b


def spatial_reference(x, params, *, patch_size, num_heads):
    with jax.default_matmul_precision("highest"):
        B, C, H, W = x.shape
        p = patch_size
        h_, w_ = H // p, W // p
        D = params["emb_w"].shape[1]
        hd = D // num_heads
        xt = (x.reshape(B, C, h_, p, w_, p)
               .transpose(0, 2, 4, 3, 5, 1)
               .reshape(B, h_ * w_, p * p * C))
        t = xt @ params["emb_w"] + params["emb_b"]
        for bp in params["blocks"]:
            B_, N_, _ = t.shape
            h = _ref_ln(t, bp["ln1_g"], bp["ln1_b"])
            qkv = (h @ bp["qkv_w"]).reshape(B_, N_, 3, num_heads, hd)
            qkv = qkv.transpose(2, 0, 3, 1, 4)
            q, k, v = qkv[0], qkv[1], qkv[2]
            s = jnp.einsum('bhnd,bhmd->bhnm', q, k) * (hd ** -0.5)
            pm = jax.nn.softmax(s, axis=-1)
            o = jnp.einsum('bhnm,bhmd->bhnd', pm, v)
            o = o.transpose(0, 2, 1, 3).reshape(B_, N_, D)
            t = t + o @ bp["proj_w"] + bp["proj_b"]
            h2 = _ref_ln(t, bp["ln2_g"], bp["ln2_b"])
            h2 = jax.nn.gelu(h2 @ bp["fc1_w"] + bp["fc1_b"], approximate=False)
            t = t + h2 @ bp["fc2_w"] + bp["fc2_b"]
        t = _ref_ln(t, params["norm_g"], params["norm_b"])
        y = t @ params["dep_w"] + params["dep_b"]
        y = y.reshape(B, h_, w_, p, p, 1).transpose(0, 5, 1, 3, 2, 4)
        return y.reshape(B, 1, H, W)


# ---------------------------------------------------------------------------
# Deterministic parameter init (mirrors nn.Linear / nn.LayerNorm shapes)
# ---------------------------------------------------------------------------

def _init_linear(key, fan_in, fan_out, bias=True):
    kw, kb = jax.random.split(key)
    bound = 1.0 / math.sqrt(fan_in)
    w = jax.random.uniform(kw, (fan_in, fan_out), jnp.float32, -bound, bound)
    b = (jax.random.uniform(kb, (fan_out,), jnp.float32, -bound, bound)
         if bias else None)
    return w, b


def init_spatial_params(key, *, channel, embed_dim, depth, num_heads, mlp_ratio,
                        patch_size):
    del num_heads  # head count affects forward only
    keys = jax.random.split(key, 2 + depth)
    patch_dim = patch_size * patch_size * channel
    hidden = int(embed_dim * mlp_ratio)

    emb_w, emb_b = _init_linear(keys[0], patch_dim, embed_dim)

    blocks = []
    for i in range(depth):
        bk = jax.random.split(keys[2 + i], 4)
        qkv_w, _ = _init_linear(bk[0], embed_dim, embed_dim * 3, bias=False)
        proj_w, proj_b = _init_linear(bk[1], embed_dim, embed_dim)
        fc1_w, fc1_b = _init_linear(bk[2], embed_dim, hidden)
        fc2_w, fc2_b = _init_linear(bk[3], hidden, embed_dim)
        blocks.append(dict(
            ln1_g=jnp.ones((embed_dim,), jnp.float32),
            ln1_b=jnp.zeros((embed_dim,), jnp.float32),
            qkv_w=qkv_w, proj_w=proj_w, proj_b=proj_b,
            ln2_g=jnp.ones((embed_dim,), jnp.float32),
            ln2_b=jnp.zeros((embed_dim,), jnp.float32),
            fc1_w=fc1_w, fc1_b=fc1_b, fc2_w=fc2_w, fc2_b=fc2_b,
        ))

    dep_w, dep_b = _init_linear(keys[1], embed_dim, patch_size * patch_size)

    return dict(
        emb_w=emb_w, emb_b=emb_b,
        blocks=blocks,
        norm_g=jnp.ones((embed_dim,), jnp.float32),
        norm_b=jnp.zeros((embed_dim,), jnp.float32),
        dep_w=dep_w, dep_b=dep_b,
    )


# ---------------------------------------------------------------------------

if __name__ == "__main__":
    # small-but-consistent config: channel=4, patch=4, embed_dim=32, 4 heads
    B, C, H, W = 2, 4, 16, 16
    patch_size = 4
    embed_dim = 32
    depth = 2
    num_heads = 4          # head_dim = 8
    mlp_ratio = 2.0

    key = jax.random.PRNGKey(0)
    kx, kp = jax.random.split(key)
    x = jax.random.normal(kx, (B, C, H, W), jnp.float32)

    params = init_spatial_params(
        kp, channel=C, embed_dim=embed_dim, depth=depth,
        num_heads=num_heads, mlp_ratio=mlp_ratio, patch_size=patch_size)

    out = spatial_forward(x, params, patch_size=patch_size, num_heads=num_heads)
    out = jax.block_until_ready(out)

    assert out.shape == (B, 1, H, W), out.shape
    assert bool(jnp.all(jnp.isfinite(out)))

    ref = spatial_reference(x, params, patch_size=patch_size,
                            num_heads=num_heads)
    max_err = float(jnp.max(jnp.abs(out - ref)))
    assert max_err < 5e-2, f"max abs error vs reference: {max_err}"

    print("KERNEL_OK")
</pallas_src>

<mosaic_0001>
module attributes {stable_mosaic.version = 11 : i64} {
  func.func @_spatial_kernel(%arg0: i32, %arg1: memref<1x16x64xf32, #tpu.memory_space<vmem>>, %arg2: memref<64x32xf32, #tpu.memory_space<vmem>>, %arg3: memref<1x32xf32, #tpu.memory_space<vmem>>, %arg4: memref<2x1x32xf32, #tpu.memory_space<vmem>>, %arg5: memref<2x1x32xf32, #tpu.memory_space<vmem>>, %arg6: memref<2x4x32x8xf32, #tpu.memory_space<vmem>>, %arg7: memref<2x4x32x8xf32, #tpu.memory_space<vmem>>, %arg8: memref<2x4x32x8xf32, #tpu.memory_space<vmem>>, %arg9: memref<2x32x32xf32, #tpu.memory_space<vmem>>, %arg10: memref<2x1x32xf32, #tpu.memory_space<vmem>>, %arg11: memref<2x1x32xf32, #tpu.memory_space<vmem>>, %arg12: memref<2x1x32xf32, #tpu.memory_space<vmem>>, %arg13: memref<2x32x64xf32, #tpu.memory_space<vmem>>, %arg14: memref<2x1x64xf32, #tpu.memory_space<vmem>>, %arg15: memref<2x64x32xf32, #tpu.memory_space<vmem>>, %arg16: memref<2x1x32xf32, #tpu.memory_space<vmem>>, %arg17: memref<1x32xf32, #tpu.memory_space<vmem>>, %arg18: memref<1x32xf32, #tpu.memory_space<vmem>>, %arg19: memref<32x16xf32, #tpu.memory_space<vmem>>, %arg20: memref<1x16xf32, #tpu.memory_space<vmem>>, %arg21: memref<1x16x16xf32, #tpu.memory_space<vmem>>) attributes {dimension_semantics = [#tpu.dimension_semantics<parallel>], iteration_bounds = array<i64: 2>, scalar_prefetch = 0 : i64, scratch_operands = 0 : i64, tpu.core_type = #tpu.core_type<tc>, window_params = [{transform_indices = @transform_0, window_bounds = array<i64: 1, 16, 64>}, {pipeline_mode = #tpu.pipeline_mode<synchronous>, transform_indices = @transform_1, window_bounds = array<i64: 64, 32>}, {pipeline_mode = #tpu.pipeline_mode<synchronous>, transform_indices = @transform_2, window_bounds = array<i64: 1, 32>}, {pipeline_mode = #tpu.pipeline_mode<synchronous>, transform_indices = @transform_3, window_bounds = array<i64: 2, 1, 32>}, {pipeline_mode = #tpu.pipeline_mode<synchronous>, transform_indices = @transform_4, window_bounds = array<i64: 2, 1, 32>}, {pipeline_mode = #tpu.pipeline_mode<synchronous>, transform_indices = @transform_5, window_bounds = array<i64: 2, 4, 32, 8>}, {pipeline_mode = #tpu.pipeline_mode<synchronous>, transform_indices = @transform_6, window_bounds = array<i64: 2, 4, 32, 8>}, {pipeline_mode = #tpu.pipeline_mode<synchronous>, transform_indices = @transform_7, window_bounds = array<i64: 2, 4, 32, 8>}, {pipeline_mode = #tpu.pipeline_mode<synchronous>, transform_indices = @transform_8, window_bounds = array<i64: 2, 32, 32>}, {pipeline_mode = #tpu.pipeline_mode<synchronous>, transform_indices = @transform_9, window_bounds = array<i64: 2, 1, 32>}, {pipeline_mode = #tpu.pipeline_mode<synchronous>, transform_indices = @transform_10, window_bounds = array<i64: 2, 1, 32>}, {pipeline_mode = #tpu.pipeline_mode<synchronous>, transform_indices = @transform_11, window_bounds = array<i64: 2, 1, 32>}, {pipeline_mode = #tpu.pipeline_mode<synchronous>, transform_indices = @transform_12, window_bounds = array<i64: 2, 32, 64>}, {pipeline_mode = #tpu.pipeline_mode<synchronous>, transform_indices = @transform_13, window_bounds = array<i64: 2, 1, 64>}, {pipeline_mode = #tpu.pipeline_mode<synchronous>, transform_indices = @transform_14, window_bounds = array<i64: 2, 64, 32>}, {pipeline_mode = #tpu.pipeline_mode<synchronous>, transform_indices = @transform_15, window_bounds = array<i64: 2, 1, 32>}, {pipeline_mode = #tpu.pipeline_mode<synchronous>, transform_indices = @transform_16, window_bounds = array<i64: 1, 32>}, {pipeline_mode = #tpu.pipeline_mode<synchronous>, transform_indices = @transform_17, window_bounds = array<i64: 1, 32>}, {pipeline_mode = #tpu.pipeline_mode<synchronous>, transform_indices = @transform_18, window_bounds = array<i64: 32, 16>}, {pipeline_mode = #tpu.pipeline_mode<synchronous>, transform_indices = @transform_19, window_bounds = array<i64: 1, 16>}, {transform_indices = @transform_20, window_bounds = array<i64: 1, 16, 16>}]} {
    %c0 = arith.constant 0 : index
    %c0_0 = arith.constant 0 : index
    %c0_1 = arith.constant 0 : index
    %0 = vector.load %arg1[%c0, %c0_0, %c0_1] : memref<1x16x64xf32, #tpu.memory_space<vmem>>, vector<1x16x64xf32>
    %1 = vector.shape_cast %0 : vector<1x16x64xf32> to vector<16x64xf32>
    %c0_2 = arith.constant 0 : index
    %c0_3 = arith.constant 0 : index
    %2 = vector.load %arg2[%c0_2, %c0_3] : memref<64x32xf32, #tpu.memory_space<vmem>>, vector<64x32xf32>
    %cst = arith.constant dense<0.000000e+00> : vector<16x32xf32>
    %3 = tpu.matmul %1, %2, %cst {dimension_numbers = #tpu.dot_dimension_numbers<[1], [0], [0], [1], [0, 0, 1, 1], [], []>} : vector<16x64xf32>, vector<64x32xf32>, vector<16x32xf32> -> vector<16x32xf32>
    %c0_4 = arith.constant 0 : index
    %c0_5 = arith.constant 0 : index
    %4 = vector.load %arg3[%c0_4, %c0_5] : memref<1x32xf32, #tpu.memory_space<vmem>>, vector<1x32xf32>
    %5 = vector.broadcast %4 : vector<1x32xf32> to vector<16x32xf32>
    %6 = arith.addf %3, %5 : vector<16x32xf32>
    %c0_i32 = arith.constant 0 : i32
    %c2_i32 = arith.constant 2 : i32
    %7 = arith.addi %c0_i32, %c2_i32 : i32
    %c1_i32 = arith.constant 1 : i32
    %8 = scf.for %arg22 = %c0_i32 to %7 step %c1_i32 iter_args(%arg23 = %6) -> (vector<16x32xf32>)  : i32 {
      %41 = arith.index_cast %arg22 : i32 to index
      %c0_24 = arith.constant 0 : index
      %c0_25 = arith.constant 0 : index
      %42 = vector.load %arg4[%41, %c0_24, %c0_25] : memref<2x1x32xf32, #tpu.memory_space<vmem>>, vector<1x1x32xf32>
      %43 = vector.shape_cast %42 : vector<1x1x32xf32> to vector<1x32xf32>
      %44 = arith.index_cast %arg22 : i32 to index
      %c0_26 = arith.constant 0 : index
      %c0_27 = arith.constant 0 : index
      %45 = vector.load %arg5[%44, %c0_26, %c0_27] : memref<2x1x32xf32, #tpu.memory_space<vmem>>, vector<1x1x32xf32>
      %46 = vector.shape_cast %45 : vector<1x1x32xf32> to vector<1x32xf32>
      %cst_28 = arith.constant dense<0.000000e+00> : vector<16xf32>
      %47 = vector.multi_reduction <add>, %arg23, %cst_28 [1] : vector<16x32xf32> to vector<16xf32>
      %48 = vector.shape_cast %47 : vector<16xf32> to vector<16x1xf32>
      %cst_29 = arith.constant 3.200000e+01 : f32
      %49 = vector.broadcast %cst_29 : f32 to vector<16x1xf32>
      %50 = arith.divf %48, %49 : vector<16x1xf32>
      %51 = vector.broadcast %50 : vector<16x1xf32> to vector<16x32xf32>
      %52 = arith.subf %arg23, %51 : vector<16x32xf32>
      %53 = arith.mulf %52, %52 : vector<16x32xf32>
      %cst_30 = arith.constant dense<0.000000e+00> : vector<16xf32>
      %54 = vector.multi_reduction <add>, %53, %cst_30 [1] : vector<16x32xf32> to vector<16xf32>
      %55 = vector.shape_cast %54 : vector<16xf32> to vector<16x1xf32>
      %cst_31 = arith.constant 3.200000e+01 : f32
      %56 = vector.broadcast %cst_31 : f32 to vector<16x1xf32>
      %57 = arith.divf %55, %56 : vector<16x1xf32>
      %58 = vector.broadcast %50 : vector<16x1xf32> to vector<16x32xf32>
      %59 = arith.subf %arg23, %58 : vector<16x32xf32>
      %cst_32 = arith.constant 9.99999974E-6 : f32
      %60 = vector.broadcast %cst_32 : f32 to vector<16x1xf32>
      %61 = arith.addf %57, %60 : vector<16x1xf32>
      %62 = math.rsqrt %61 : vector<16x1xf32>
      %63 = vector.broadcast %62 : vector<16x1xf32> to vector<16x32xf32>
      %64 = arith.mulf %59, %63 : vector<16x32xf32>
      %65 = vector.broadcast %43 : vector<1x32xf32> to vector<16x32xf32>
      %66 = arith.mulf %64, %65 : vector<16x32xf32>
      %67 = vector.broadcast %46 : vector<1x32xf32> to vector<16x32xf32>
      %68 = arith.addf %66, %67 : vector<16x32xf32>
      %69 = vector.shape_cast %68 : vector<16x32xf32> to vector<1x16x32xf32>
      %70 = vector.broadcast %69 : vector<1x16x32xf32> to vector<4x16x32xf32>
      %71 = arith.index_cast %arg22 : i32 to index
      %c0_33 = arith.constant 0 : index
      %c0_34 = arith.constant 0 : index
      %c0_35 = arith.constant 0 : index
      %72 = vector.load %arg6[%71, %c0_33, %c0_34, %c0_35] : memref<2x4x32x8xf32, #tpu.memory_space<vmem>>, vector<1x4x32x8xf32>
      %73 = vector.shape_cast %72 : vector<1x4x32x8xf32> to vector<4x32x8xf32>
      "tpu.trace_start"() <{level = 10 : i32, message = "hnd,hde->hne"}> : () -> ()
      %cst_36 = arith.constant dense<0.000000e+00> : vector<4x16x8xf32>
      %74 = tpu.matmul %70, %73, %cst_36 {dimension_numbers = #tpu.dot_dimension_numbers<[2], [1], [1], [2], [0, 0, 0, 1, 1, 2], [0], [0]>} : vector<4x16x32xf32>, vector<4x32x8xf32>, vector<4x16x8xf32> -> vector<4x16x8xf32>
      "tpu.trace_stop"() : () -> ()
      %75 = arith.index_cast %arg22 : i32 to index
      %c0_37 = arith.constant 0 : index
      %c0_38 = arith.constant 0 : index
      %c0_39 = arith.constant 0 : index
      %76 = vector.load %arg7[%75, %c0_37, %c0_38, %c0_39] : memref<2x4x32x8xf32, #tpu.memory_space<vmem>>, vector<1x4x32x8xf32>
      %77 = vector.shape_cast %76 : vector<1x4x32x8xf32> to vector<4x32x8xf32>
      "tpu.trace_start"() <{level = 10 : i32, message = "hnd,hde->hne"}> : () -> ()
      %cst_40 = arith.constant dense<0.000000e+00> : vector<4x16x8xf32>
      %78 = tpu.matmul %70, %77, %cst_40 {dimension_numbers = #tpu.dot_dimension_numbers<[2], [1], [1], [2], [0, 0, 0, 1, 1, 2], [0], [0]>} : vector<4x16x32xf32>, vector<4x32x8xf32>, vector<4x16x8xf32> -> vector<4x16x8xf32>
      "tpu.trace_stop"() : () -> ()
      %79 = arith.index_cast %arg22 : i32 to index
      %c0_41 = arith.constant 0 : index
      %c0_42 = arith.constant 0 : index
      %c0_43 = arith.constant 0 : index
      %80 = vector.load %arg8[%79, %c0_41, %c0_42, %c0_43] : memref<2x4x32x8xf32, #tpu.memory_space<vmem>>, vector<1x4x32x8xf32>
      %81 = vector.shape_cast %80 : vector<1x4x32x8xf32> to vector<4x32x8xf32>
      "tpu.trace_start"() <{level = 10 : i32, message = "hnd,hde->hne"}> : () -> ()
      %cst_44 = arith.constant dense<0.000000e+00> : vector<4x16x8xf32>
      %82 = tpu.matmul %70, %81, %cst_44 {dimension_numbers = #tpu.dot_dimension_numbers<[2], [1], [1], [2], [0, 0, 0, 1, 1, 2], [0], [0]>} : vector<4x16x32xf32>, vector<4x32x8xf32>, vector<4x16x8xf32> -> vector<4x16x8xf32>
      "tpu.trace_stop"() : () -> ()
      "tpu.trace_start"() <{level = 10 : i32, message = "hne,hme->hnm"}> : () -> ()
      %cst_45 = arith.constant dense<0.000000e+00> : vector<4x16x16xf32>
      %83 = tpu.matmul %74, %78, %cst_45 {dimension_numbers = #tpu.dot_dimension_numbers<[2], [2], [1], [1], [0, 0, 0, 1, 1, 1], [0], [0]>} : vector<4x16x8xf32>, vector<4x16x8xf32>, vector<4x16x16xf32> -> vector<4x16x16xf32>
      "tpu.trace_stop"() : () -> ()
      %cst_46 = arith.constant 0.353553385 : f32
      %84 = vector.broadcast %cst_46 : f32 to vector<4x16x16xf32>
      %85 = arith.mulf %83, %84 : vector<4x16x16xf32>
      %cst_47 = arith.constant dense<0xFF800000> : vector<4x16xf32>
      %86 = vector.multi_reduction <maximumf>, %85, %cst_47 [2] : vector<4x16x16xf32> to vector<4x16xf32>
      %87 = vector.shape_cast %86 : vector<4x16xf32> to vector<4x16x1xf32>
      %88 = vector.broadcast %87 : vector<4x16x1xf32> to vector<4x16x16xf32>
      %89 = arith.subf %85, %88 : vector<4x16x16xf32>
      %90 = math.exp %89 : vector<4x16x16xf32>
      %cst_48 = arith.constant dense<0.000000e+00> : vector<4x16xf32>
      %91 = vector.multi_reduction <add>, %90, %cst_48 [2] : vector<4x16x16xf32> to vector<4x16xf32>
      %92 = vector.shape_cast %91 : vector<4x16xf32> to vector<4x16x1xf32>
      %93 = tpu.reciprocal %92 {approx = true} : vector<4x16x1xf32> -> vector<4x16x1xf32>
      %94 = vector.broadcast %93 : vector<4x16x1xf32> to vector<4x16x16xf32>
      %95 = arith.mulf %90, %94 : vector<4x16x16xf32>
      "tpu.trace_start"() <{level = 10 : i32, message = "hnm,hme->hne"}> : () -> ()
      %cst_49 = arith.constant dense<0.000000e+00> : vector<4x16x8xf32>
      %96 = tpu.matmul %95, %82, %cst_49 {dimension_numbers = #tpu.dot_dimension_numbers<[2], [1], [1], [2], [0, 0, 0, 1, 1, 2], [0], [0]>} : vector<4x16x16xf32>, vector<4x16x8xf32>, vector<4x16x8xf32> -> vector<4x16x8xf32>
      "tpu.trace_stop"() : () -> ()
      %97 = vector.extract_strided_slice %96 {offsets = [0, 0, 0], sizes = [1, 16, 8], strides = [1, 1, 1]} : vector<4x16x8xf32> to vector<1x16x8xf32>
      %98 = vector.shape_cast %97 : vector<1x16x8xf32> to vector<16x8xf32>
      %99 = vector.extract_strided_slice %96 {offsets = [1, 0, 0], sizes = [1, 16, 8], strides = [1, 1, 1]} : vector<4x16x8xf32> to vector<1x16x8xf32>
      %100 = vector.shape_cast %99 : vector<1x16x8xf32> to vector<16x8xf32>
      %101 = vector.extract_strided_slice %96 {offsets = [2, 0, 0], sizes = [1, 16, 8], strides = [1, 1, 1]} : vector<4x16x8xf32> to vector<1x16x8xf32>
      %102 = vector.shape_cast %101 : vector<1x16x8xf32> to vector<16x8xf32>
      %103 = vector.extract_strided_slice %96 {offsets = [3, 0, 0], sizes = [1, 16, 8], strides = [1, 1, 1]} : vector<4x16x8xf32> to vector<1x16x8xf32>
      %104 = vector.shape_cast %103 : vector<1x16x8xf32> to vector<16x8xf32>
      %105 = tpu.concatenate %98, %100, %102, %104 in 1 : vector<16x8xf32>, vector<16x8xf32>, vector<16x8xf32>, vector<16x8xf32> -> vector<16x32xf32>
      %106 = arith.index_cast %arg22 : i32 to index
      %c0_50 = arith.constant 0 : index
      %c0_51 = arith.constant 0 : index
      %107 = vector.load %arg9[%106, %c0_50, %c0_51] : memref<2x32x32xf32, #tpu.memory_space<vmem>>, vector<1x32x32xf32>
      %108 = vector.shape_cast %107 : vector<1x32x32xf32> to vector<32x32xf32>
      %cst_52 = arith.constant dense<0.000000e+00> : vector<16x32xf32>
      %109 = tpu.matmul %105, %108, %cst_52 {dimension_numbers = #tpu.dot_dimension_numbers<[1], [0], [0], [1], [0, 0, 1, 1], [], []>} : vector<16x32xf32>, vector<32x32xf32>, vector<16x32xf32> -> vector<16x32xf32>
      %110 = arith.addf %arg23, %109 : vector<16x32xf32>
      %111 = arith.index_cast %arg22 : i32 to index
      %c0_53 = arith.constant 0 : index
      %c0_54 = arith.constant 0 : index
      %112 = vector.load %arg10[%111, %c0_53, %c0_54] : memref<2x1x32xf32, #tpu.memory_space<vmem>>, vector<1x1x32xf32>
      %113 = vector.shape_cast %112 : vector<1x1x32xf32> to vector<1x32xf32>
      %114 = vector.broadcast %113 : vector<1x32xf32> to vector<16x32xf32>
      %115 = arith.addf %110, %114 : vector<16x32xf32>
      %116 = arith.index_cast %arg22 : i32 to index
      %c0_55 = arith.constant 0 : index
      %c0_56 = arith.constant 0 : index
      %117 = vector.load %arg11[%116, %c0_55, %c0_56] : memref<2x1x32xf32, #tpu.memory_space<vmem>>, vector<1x1x32xf32>
      %118 = vector.shape_cast %117 : vector<1x1x32xf32> to vector<1x32xf32>
      %119 = arith.index_cast %arg22 : i32 to index
      %c0_57 = arith.constant 0 : index
      %c0_58 = arith.constant 0 : index
      %120 = vector.load %arg12[%119, %c0_57, %c0_58] : memref<2x1x32xf32, #tpu.memory_space<vmem>>, vector<1x1x32xf32>
      %121 = vector.shape_cast %120 : vector<1x1x32xf32> to vector<1x32xf32>
      %cst_59 = arith.constant dense<0.000000e+00> : vector<16xf32>
      %122 = vector.multi_reduction <add>, %115, %cst_59 [1] : vector<16x32xf32> to vector<16xf32>
      %123 = vector.shape_cast %122 : vector<16xf32> to vector<16x1xf32>
      %cst_60 = arith.constant 3.200000e+01 : f32
      %124 = vector.broadcast %cst_60 : f32 to vector<16x1xf32>
      %125 = arith.divf %123, %124 : vector<16x1xf32>
      %126 = vector.broadcast %125 : vector<16x1xf32> to vector<16x32xf32>
      %127 = arith.subf %115, %126 : vector<16x32xf32>
      %128 = arith.mulf %127, %127 : vector<16x32xf32>
      %cst_61 = arith.constant dense<0.000000e+00> : vector<16xf32>
      %129 = vector.multi_reduction <add>, %128, %cst_61 [1] : vector<16x32xf32> to vector<16xf32>
      %130 = vector.shape_cast %129 : vector<16xf32> to vector<16x1xf32>
      %cst_62 = arith.constant 3.200000e+01 : f32
      %131 = vector.broadcast %cst_62 : f32 to vector<16x1xf32>
      %132 = arith.divf %130, %131 : vector<16x1xf32>
      %133 = vector.broadcast %125 : vector<16x1xf32> to vector<16x32xf32>
      %134 = arith.subf %115, %133 : vector<16x32xf32>
      %cst_63 = arith.constant 9.99999974E-6 : f32
      %135 = vector.broadcast %cst_63 : f32 to vector<16x1xf32>
      %136 = arith.addf %132, %135 : vector<16x1xf32>
      %137 = math.rsqrt %136 : vector<16x1xf32>
      %138 = vector.broadcast %137 : vector<16x1xf32> to vector<16x32xf32>
      %139 = arith.mulf %134, %138 : vector<16x32xf32>
      %140 = vector.broadcast %118 : vector<1x32xf32> to vector<16x32xf32>
      %141 = arith.mulf %139, %140 : vector<16x32xf32>
      %142 = vector.broadcast %121 : vector<1x32xf32> to vector<16x32xf32>
      %143 = arith.addf %141, %142 : vector<16x32xf32>
      %144 = arith.index_cast %arg22 : i32 to index
      %c0_64 = arith.constant 0 : index
      %c0_65 = arith.constant 0 : index
      %145 = vector.load %arg13[%144, %c0_64, %c0_65] : memref<2x32x64xf32, #tpu.memory_space<vmem>>, vector<1x32x64xf32>
      %146 = vector.shape_cast %145 : vector<1x32x64xf32> to vector<32x64xf32>
      %cst_66 = arith.constant dense<0.000000e+00> : vector<16x64xf32>
      %147 = tpu.matmul %143, %146, %cst_66 {dimension_numbers = #tpu.dot_dimension_numbers<[1], [0], [0], [1], [0, 0, 1, 1], [], []>} : vector<16x32xf32>, vector<32x64xf32>, vector<16x64xf32> -> vector<16x64xf32>
      %148 = arith.index_cast %arg22 : i32 to index
      %c0_67 = arith.constant 0 : index
      %c0_68 = arith.constant 0 : index
      %149 = vector.load %arg14[%148, %c0_67, %c0_68] : memref<2x1x64xf32, #tpu.memory_space<vmem>>, vector<1x1x64xf32>
      %150 = vector.shape_cast %149 : vector<1x1x64xf32> to vector<1x64xf32>
      %151 = vector.broadcast %150 : vector<1x64xf32> to vector<16x64xf32>
      %152 = arith.addf %147, %151 : vector<16x64xf32>
      %cst_69 = arith.constant 5.000000e-01 : f32
      %153 = vector.broadcast %cst_69 : f32 to vector<16x64xf32>
      %154 = arith.mulf %153, %152 : vector<16x64xf32>
      %cst_70 = arith.constant 0.707106769 : f32
      %155 = vector.broadcast %cst_70 : f32 to vector<16x64xf32>
      %156 = arith.mulf %152, %155 : vector<16x64xf32>
      %157 = math.erf %156 : vector<16x64xf32>
      %cst_71 = arith.constant 1.000000e+00 : f32
      %158 = vector.broadcast %cst_71 : f32 to vector<16x64xf32>
      %159 = arith.addf %158, %157 : vector<16x64xf32>
      %160 = arith.mulf %154, %159 : vector<16x64xf32>
      %161 = arith.index_cast %arg22 : i32 to index
      %c0_72 = arith.constant 0 : index
      %c0_73 = arith.constant 0 : index
      %162 = vector.load %arg15[%161, %c0_72, %c0_73] : memref<2x64x32xf32, #tpu.memory_space<vmem>>, vector<1x64x32xf32>
      %163 = vector.shape_cast %162 : vector<1x64x32xf32> to vector<64x32xf32>
      %cst_74 = arith.constant dense<0.000000e+00> : vector<16x32xf32>
      %164 = tpu.matmul %160, %163, %cst_74 {dimension_numbers = #tpu.dot_dimension_numbers<[1], [0], [0], [1], [0, 0, 1, 1], [], []>} : vector<16x64xf32>, vector<64x32xf32>, vector<16x32xf32> -> vector<16x32xf32>
      %165 = arith.index_cast %arg22 : i32 to index
      %c0_75 = arith.constant 0 : index
      %c0_76 = arith.constant 0 : index
      %166 = vector.load %arg16[%165, %c0_75, %c0_76] : memref<2x1x32xf32, #tpu.memory_space<vmem>>, vector<1x1x32xf32>
      %167 = vector.shape_cast %166 : vector<1x1x32xf32> to vector<1x32xf32>
      %168 = vector.broadcast %167 : vector<1x32xf32> to vector<16x32xf32>
      %169 = arith.addf %164, %168 : vector<16x32xf32>
      %170 = arith.addf %115, %169 : vector<16x32xf32>
      scf.yield %170 : vector<16x32xf32>
    }
    %c2_i32_6 = arith.constant 2 : i32
    %c0_7 = arith.constant 0 : index
    %c0_8 = arith.constant 0 : index
    %9 = vector.load %arg17[%c0_7, %c0_8] : memref<1x32xf32, #tpu.memory_space<vmem>>, vector<1x32xf32>
    %c0_9 = arith.constant 0 : index
    %c0_10 = arith.constant 0 : index
    %10 = vector.load %arg18[%c0_9, %c0_10] : memref<1x32xf32, #tpu.memory_space<vmem>>, vector<1x32xf32>
    %cst_11 = arith.constant dense<0.000000e+00> : vector<16xf32>
    %11 = vector.multi_reduction <add>, %8, %cst_11 [1] : vector<16x32xf32> to vector<16xf32>
    %12 = vector.shape_cast %11 : vector<16xf32> to vector<16x1xf32>
    %cst_12 = arith.constant 3.200000e+01 : f32
    %13 = vector.broadcast %cst_12 : f32 to vector<16x1xf32>
    %14 = arith.divf %12, %13 : vector<16x1xf32>
    %15 = vector.broadcast %14 : vector<16x1xf32> to vector<16x32xf32>
    %16 = arith.subf %8, %15 : vector<16x32xf32>
    %17 = arith.mulf %16, %16 : vector<16x32xf32>
    %cst_13 = arith.constant dense<0.000000e+00> : vector<16xf32>
    %18 = vector.multi_reduction <add>, %17, %cst_13 [1] : vector<16x32xf32> to vector<16xf32>
    %19 = vector.shape_cast %18 : vector<16xf32> to vector<16x1xf32>
    %cst_14 = arith.constant 3.200000e+01 : f32
    %20 = vector.broadcast %cst_14 : f32 to vector<16x1xf32>
    %21 = arith.divf %19, %20 : vector<16x1xf32>
    %22 = vector.broadcast %14 : vector<16x1xf32> to vector<16x32xf32>
    %23 = arith.subf %8, %22 : vector<16x32xf32>
    %cst_15 = arith.constant 9.99999974E-6 : f32
    %24 = vector.broadcast %cst_15 : f32 to vector<16x1xf32>
    %25 = arith.addf %21, %24 : vector<16x1xf32>
    %26 = math.rsqrt %25 : vector<16x1xf32>
    %27 = vector.broadcast %26 : vector<16x1xf32> to vector<16x32xf32>
    %28 = arith.mulf %23, %27 : vector<16x32xf32>
    %29 = vector.broadcast %9 : vector<1x32xf32> to vector<16x32xf32>
    %30 = arith.mulf %28, %29 : vector<16x32xf32>
    %31 = vector.broadcast %10 : vector<1x32xf32> to vector<16x32xf32>
    %32 = arith.addf %30, %31 : vector<16x32xf32>
    %c0_16 = arith.constant 0 : index
    %c0_17 = arith.constant 0 : index
    %33 = vector.load %arg19[%c0_16, %c0_17] : memref<32x16xf32, #tpu.memory_space<vmem>>, vector<32x16xf32>
    %cst_18 = arith.constant dense<0.000000e+00> : vector<16x16xf32>
    %34 = tpu.matmul %32, %33, %cst_18 {dimension_numbers = #tpu.dot_dimension_numbers<[1], [0], [0], [1], [0, 0, 1, 1], [], []>} : vector<16x32xf32>, vector<32x16xf32>, vector<16x16xf32> -> vector<16x16xf32>
    %c0_19 = arith.constant 0 : index
    %c0_20 = arith.constant 0 : index
    %35 = vector.load %arg20[%c0_19, %c0_20] : memref<1x16xf32, #tpu.memory_space<vmem>>, vector<1x16xf32>
    %36 = vector.broadcast %35 : vector<1x16xf32> to vector<16x16xf32>
    %37 = arith.addf %34, %36 : vector<16x16xf32>
    %c0_21 = arith.constant 0 : index
    %c0_22 = arith.constant 0 : index
    %c0_23 = arith.constant 0 : index
    %38 = vector.load %arg21[%c0_21, %c0_22, %c0_23] : memref<1x16x16xf32, #tpu.memory_space<vmem>>, vector<1x16x16xf32>
    %39 = vector.shape_cast %38 : vector<1x16x16xf32> to vector<16x16xf32>
    %40 = vector.shape_cast %37 : vector<16x16xf32> to vector<1x16x16xf32>
    tpu.vector_store %arg21[%c0_21, %c0_22, %c0_23], %40 {strides = array<i32>} : memref<1x16x16xf32, #tpu.memory_space<vmem>>, vector<1x16x16xf32>,
    return
  }
  func.func @transform_0(%arg0: i32) -> (i32, i32, i32) {
    %c0_i32 = arith.constant 0 : i32
    %c0_i32_0 = arith.constant 0 : i32
    %c0_i32_1 = arith.constant 0 : i32
    return %arg0, %c0_i32, %c0_i32_0 : i32, i32, i32
  }
  func.func @transform_1(%arg0: i32) -> (i32, i32) {
    %c0_i32 = arith.constant 0 : i32
    %c0_i32_0 = arith.constant 0 : i32
    %c0_i32_1 = arith.constant 0 : i32
    return %c0_i32, %c0_i32_0 : i32, i32
  }
  func.func @transform_2(%arg0: i32) -> (i32, i32) {
    %c0_i32 = arith.constant 0 : i32
    %c0_i32_0 = arith.constant 0 : i32
    %c0_i32_1 = arith.constant 0 : i32
    return %c0_i32, %c0_i32_0 : i32, i32
  }
  func.func @transform_3(%arg0: i32) -> (i32, i32, i32) {
    %c0_i32 = arith.constant 0 : i32
    %c0_i32_0 = arith.constant 0 : i32
    %c0_i32_1 = arith.constant 0 : i32
    %c0_i32_2 = arith.constant 0 : i32
    return %c0_i32, %c0_i32_0, %c0_i32_1 : i32, i32, i32
  }
  func.func @transform_4(%arg0: i32) -> (i32, i32, i32) {
    %c0_i32 = arith.constant 0 : i32
    %c0_i32_0 = arith.constant 0 : i32
    %c0_i32_1 = arith.constant 0 : i32
    %c0_i32_2 = arith.constant 0 : i32
    return %c0_i32, %c0_i32_0, %c0_i32_1 : i32, i32, i32
  }
  func.func @transform_5(%arg0: i32) -> (i32, i32, i32, i32) {
    %c0_i32 = arith.constant 0 : i32
    %c0_i32_0 = arith.constant 0 : i32
    %c0_i32_1 = arith.constant 0 : i32
    %c0_i32_2 = arith.constant 0 : i32
    %c0_i32_3 = arith.constant 0 : i32
    return %c0_i32, %c0_i32_0, %c0_i32_1, %c0_i32_2 : i32, i32, i32, i32
  }
  func.func @transform_6(%arg0: i32) -> (i32, i32, i32, i32) {
    %c0_i32 = arith.constant 0 : i32
    %c0_i32_0 = arith.constant 0 : i32
    %c0_i32_1 = arith.constant 0 : i32
    %c0_i32_2 = arith.constant 0 : i32
    %c0_i32_3 = arith.constant 0 : i32
    return %c0_i32, %c0_i32_0, %c0_i32_1, %c0_i32_2 : i32, i32, i32, i32
  }
  func.func @transform_7(%arg0: i32) -> (i32, i32, i32, i32) {
    %c0_i32 = arith.constant 0 : i32
    %c0_i32_0 = arith.constant 0 : i32
    %c0_i32_1 = arith.constant 0 : i32
    %c0_i32_2 = arith.constant 0 : i32
    %c0_i32_3 = arith.constant 0 : i32
    return %c0_i32, %c0_i32_0, %c0_i32_1, %c0_i32_2 : i32, i32, i32, i32
  }
  func.func @transform_8(%arg0: i32) -> (i32, i32, i32) {
    %c0_i32 = arith.constant 0 : i32
    %c0_i32_0 = arith.constant 0 : i32
    %c0_i32_1 = arith.constant 0 : i32
    %c0_i32_2 = arith.constant 0 : i32
    return %c0_i32, %c0_i32_0, %c0_i32_1 : i32, i32, i32
  }
  func.func @transform_9(%arg0: i32) -> (i32, i32, i32) {
    %c0_i32 = arith.constant 0 : i32
    %c0_i32_0 = arith.constant 0 : i32
    %c0_i32_1 = arith.constant 0 : i32
    %c0_i32_2 = arith.constant 0 : i32
    return %c0_i32, %c0_i32_0, %c0_i32_1 : i32, i32, i32
  }
  func.func @transform_10(%arg0: i32) -> (i32, i32, i32) {
    %c0_i32 = arith.constant 0 : i32
    %c0_i32_0 = arith.constant 0 : i32
    %c0_i32_1 = arith.constant 0 : i32
    %c0_i32_2 = arith.constant 0 : i32
    return %c0_i32, %c0_i32_0, %c0_i32_1 : i32, i32, i32
  }
  func.func @transform_11(%arg0: i32) -> (i32, i32, i32) {
    %c0_i32 = arith.constant 0 : i32
    %c0_i32_0 = arith.constant 0 : i32
    %c0_i32_1 = arith.constant 0 : i32
    %c0_i32_2 = arith.constant 0 : i32
    return %c0_i32, %c0_i32_0, %c0_i32_1 : i32, i32, i32
  }
  func.func @transform_12(%arg0: i32) -> (i32, i32, i32) {
    %c0_i32 = arith.constant 0 : i32
    %c0_i32_0 = arith.constant 0 : i32
    %c0_i32_1 = arith.constant 0 : i32
    %c0_i32_2 = arith.constant 0 : i32
    return %c0_i32, %c0_i32_0, %c0_i32_1 : i32, i32, i32
  }
  func.func @transform_13(%arg0: i32) -> (i32, i32, i32) {
    %c0_i32 = arith.constant 0 : i32
    %c0_i32_0 = arith.constant 0 : i32
    %c0_i32_1 = arith.constant 0 : i32
    %c0_i32_2 = arith.constant 0 : i32
    return %c0_i32, %c0_i32_0, %c0_i32_1 : i32, i32, i32
  }
  func.func @transform_14(%arg0: i32) -> (i32, i32, i32) {
    %c0_i32 = arith.constant 0 : i32
    %c0_i32_0 = arith.constant 0 : i32
    %c0_i32_1 = arith.constant 0 : i32
    %c0_i32_2 = arith.constant 0 : i32
    return %c0_i32, %c0_i32_0, %c0_i32_1 : i32, i32, i32
  }
  func.func @transform_15(%arg0: i32) -> (i32, i32, i32) {
    %c0_i32 = arith.constant 0 : i32
    %c0_i32_0 = arith.constant 0 : i32
    %c0_i32_1 = arith.constant 0 : i32
    %c0_i32_2 = arith.constant 0 : i32
    return %c0_i32, %c0_i32_0, %c0_i32_1 : i32, i32, i32
  }
  func.func @transform_16(%arg0: i32) -> (i32, i32) {
    %c0_i32 = arith.constant 0 : i32
    %c0_i32_0 = arith.constant 0 : i32
    %c0_i32_1 = arith.constant 0 : i32
    return %c0_i32, %c0_i32_0 : i32, i32
  }
  func.func @transform_17(%arg0: i32) -> (i32, i32) {
    %c0_i32 = arith.constant 0 : i32
    %c0_i32_0 = arith.constant 0 : i32
    %c0_i32_1 = arith.constant 0 : i32
    return %c0_i32, %c0_i32_0 : i32, i32
  }
  func.func @transform_18(%arg0: i32) -> (i32, i32) {
    %c0_i32 = arith.constant 0 : i32
    %c0_i32_0 = arith.constant 0 : i32
    %c0_i32_1 = arith.constant 0 : i32
    return %c0_i32, %c0_i32_0 : i32, i32
  }
  func.func @transform_19(%arg0: i32) -> (i32, i32) {
    %c0_i32 = arith.constant 0 : i32
    %c0_i32_0 = arith.constant 0 : i32
    %c0_i32_1 = arith.constant 0 : i32
    return %c0_i32, %c0_i32_0 : i32, i32
  }
  func.func @transform_20(%arg0: i32) -> (i32, i32, i32) {
    %c0_i32 = arith.constant 0 : i32
    %c0_i32_0 = arith.constant 0 : i32
    %c0_i32_1 = arith.constant 0 : i32
    return %arg0, %c0_i32, %c0_i32_0 : i32, i32, i32
  }
}

</mosaic_0001>

<bundles_post_ra>
// kernel: spatial_forward.1
= control target key start
LH: loop header
LB: loop body
LE: loop exit
PB: predicated region body
PF: predicated region fallthrough
CT: control target
= control target key end

     0   :  { %s4382_s0 = inlined_call_operand.vmem [shape: f32[2,16,64], index: 0, kind: input, shape index: {}]   ;;  %s4383_s1 = inlined_call_operand.vmem [shape: f32[64,32], index: 1, kind: input, shape index: {}]   ;;  %s4384_s2 = inlined_call_operand.vmem [shape: f32[1,32], index: 2, kind: input, shape index: {}]   ;;  %s4385_s3 = inlined_call_operand.vmem [shape: f32[2,1,32], index: 3, kind: input, shape index: {}]   ;;  %s4386_s4 = inlined_call_operand.vmem [shape: f32[2,1,32], index: 4, kind: input, shape index: {}]   ;;  %s4387_s5 = inlined_call_operand.vmem [shape: f32[2,4,32,8], index: 5, kind: input, shape index: {}]   ;;  %s4388_s6 = inlined_call_operand.vmem [shape: f32[2,4,32,8], index: 6, kind: input, shape index: {}]   ;;  %s4389_s7 = inlined_call_operand.vmem [shape: f32[2,4,32,8], index: 7, kind: input, shape index: {}]   ;;  %s4390_s8 = inlined_call_operand.vmem [shape: f32[2,32,32], index: 8, kind: input, shape index: {}]   ;;  %s4391_s9 = inlined_call_operand.vmem [shape: f32[2,1,32], index: 9, kind: input, shape index: {}]   ;;  %s4392_s10 = inlined_call_operand.vmem [shape: f32[2,1,32], index: 10, kind: input, shape index: {}]   ;;  %s4393_s11 = inlined_call_operand.vmem [shape: f32[2,1,32], index: 11, kind: input, shape index: {}]   ;;  %s4394_s12 = inlined_call_operand.vmem [shape: f32[2,32,64], index: 12, kind: input, shape index: {}]   ;;  %s4395_s13 = inlined_call_operand.vmem [shape: f32[2,1,64], index: 13, kind: input, shape index: {}]   ;;  %s4396_s14 = inlined_call_operand.vmem [shape: f32[2,64,32], index: 14, kind: input, shape index: {}]   ;;  %s4397_s15 = inlined_call_operand.vmem [shape: f32[2,1,32], index: 15, kind: input, shape index: {}]   ;;  %s4398_s16 = inlined_call_operand.vmem [shape: f32[1,32], index: 16, kind: input, shape index: {}]   ;;  %s4399_s17 = inlined_call_operand.vmem [shape: f32[1,32], index: 17, kind: input, shape index: {}]   ;;  %s4400_s18 = inlined_call_operand.vmem [shape: f32[32,16], index: 18, kind: input, shape index: {}]   ;;  %s4401_s19 = inlined_call_operand.vmem [shape: f32[1,16], index: 19, kind: input, shape index: {}]   ;;  %s4402_s20 = inlined_call_operand.vmem [shape: f32[2,16,16], index: 20, kind: output, shape index: {}]  }
   0x1   :  { %4404 = sst [smem:[#allocation2_spill]] %s4382_s0 }
   0x2   :  { %4405 = sst [smem:[#allocation3_spill]] %s4383_s1  ;;  %s4021_s1 = smov 0  }
   0x3   :  { %4406 = sst [smem:[#allocation4_spill]] %s4384_s2 }
   0x4   :  { %4407 = sst [smem:[#allocation5_spill]] %s4385_s3 }
   0x5   :  { %4408 = sst [smem:[#allocation6_spill]] %s4386_s4 }
   0x6 LB: > { %s3120_s22 = sadd.s32 4294967295, %s3899_s1   ;;  %p3124_p0 = scmp.ge.s32.totalorder %s3899_s1, 1  ;;  %s3899_s1 = sphi %s4021_s1, %s30_s1  }
   0x7   : > { %p562_p1 = scmp.lt.s32.totalorder %s3899_s1, 3 }
   0x9   : > { %p563_p2 = pnand %p3124_p0, %p562_p1 }
   0xa   : > { %s4409_s2 = sld [smem:[#allocation3_spill]] (!%p563_p2)  ;;  %p620_p3 = scmp.lt.s32.totalorder (!%p563_p2), %s3120_s22, 1  ;;  %vm647_vm0 = vcmask (!%p563_p2), 523264  }
   0xb   : > { %566 = sbr.rel (%p563_p2) target bundleno = 3201 (0xc81), region = 100  ;;  %s4410_s3 = sld [smem:[#allocation2_spill]] (!%p563_p2) }
   0xc   : > { %s4411_s24 = sld [smem:[#allocation4_spill]] (!%p563_p2)  ;;  %s4070_s25 = smov (!%p563_p2), 0  }
  0x10   : > { %v632_v0 = vld [vmem:[%s4409_s2] sm:$0xff] (!%p563_p2)  ;;  %v633_v1 = vld [vmem:[%s4409_s2 + $0x8] sm:$0xff] (!%p563_p2)  ;;  %v634_v2 = vld [vmem:[%s4409_s2 + $0x10] sm:$0xff] (!%p563_p2) }
  0x11   : > { %v3606_v3 = vpack.c.bf16 (!%p563_p2), %v633_v1, %v632_v0  ;;  %v635_v4 = vld [vmem:[%s4409_s2 + $0x18] sm:$0xff] (!%p563_p2)  ;;  %v636_v6 = vld [vmem:[%s4409_s2 + $0x20] sm:$0xff] (!%p563_p2)  ;;  %v637_v7 = vld [vmem:[%s4409_s2 + $0x28] sm:$0xff] (!%p563_p2) }
  0x12   : > { %v3610_v5 = vpack.c.bf16 %v635_v4, %v634_v2  ;;  %s4419_s22 = smov (!%p620_p3, %s3120_s22), 1  ;;  %v3614_v8 = vpack.c.bf16 %v637_v7, %v636_v6  ;;  %v638_v9 = vld [vmem:[%s4409_s2 + $0x30] sm:$0xff]  ;;  %v639_v10 = vld [vmem:[%s4409_s2 + $0x38] sm:$0xff]  ;;  %v3129_v14 = vld [vmem:[%s4411_s24] ss:$0 sm:$0xff] }
  0x13   : > { %3607 = vmatprep.subr.bf16.mxu0 %v3606_v3  ;;  %s3203_s23 = sshll.u32 %s4419_s22, 4  ;;  %v3618_v12 = vpack.c.bf16 %v639_v10, %v638_v9 }
  0x14   : > { %3609 = vmatpush3.bf16.msra.mxu0 %v3606_v3  ;;  %s624_s26 = scalar_lea.vmem %s4410_s3, %s3203_s23  ;;  %s4053_s4 = scalar_lea.vmem %s4402_s20, %s3203_s23 }
  0x15   : > { %3611 = vmatprep.subr.bf16.mxu0 %v3610_v5  ;;  %v630_v11 = vld [vmem:[%s624_s26] sm:$0xff]  ;;  %v631_v13 = vld [vmem:[%s624_s26 + $0x8] sm:$0xff] }
  0x16   : > { %3363 = vmatprep.mubr.msk.f32.mxu0 %vm647_vm0, %v630_v11 }
  0x18   : > { %3613 = vmatpush3.bf16.msra.mxu0 %v3610_v5 }
  0x19   : > { %3615 = vmatprep.subr.bf16.mxu0 %v3614_v8 }
  0x1c   : > { %3617 = vmatpush3.bf16.msra.mxu0 %v3614_v8 }
  0x1d   : > { %3619 = vmatprep.subr.bf16.mxu0 %v3618_v12 }
  0x20   : > { %3621 = vmatpush3.bf16.msra.mxu0 %v3618_v12 }
  0x23   : > { %3364 = vmatmul.mubr.msk.f32.vlgmr.msra.gmra.mrb[0].mxu0 %vm647_vm0, %v631_v13 }
  0xf6   : > { %v3365_v15 = vpop.f32.mrb[0].mxu0 }
  0xf7   : > { %v726_v16 = vadd.f32 %v3365_v15, %v3129_v14   ;;  %v720_v17 = vpop.f32.mrb[1].mxu0 }
  0xf8   : > { %v721_v18 = vadd.f32 %v3129_v14, %v720_v17  }
  0xf9 LB: >> { %vm741_vm1 = vcmask 261120   ;;  %s4090_s3 = sshll.u32 %s3911_s25, 7  ;;  %s4412_s23 = sld [smem:[#allocation5_spill]]  ;;  %vm1743_vm2 = vcmask 64512   ;;  %vm2100_vm4 = vcmask 130048   ;;  %vm2541_vm5 = vcmask 195584   ;;  %s3911_s25 = sphi %s4070_s25, %s734_s25   ;;  %v3907_v18 = vphi %v721_v18, %v4417_v18   ;;  %v3903_v16 = vphi %v726_v16, %v4416_v16  }
  0xfa   : >> { %v742_v19 = vsel %vm741_vm1, %v3907_v18, 0.0  ;;  %v745_v20 = vsel %vm741_vm1, %v3903_v16, 0.0  ;;  %s4096_s28 = scalar_lea.vmem %s4387_s5, %s4090_s3  ;;  %s4109_s0 = scalar_lea.vmem %s4388_s6, %s4090_s3  ;;  %vm4221_vm3 = vmpackc.low %vm1743_vm2, %vm1743_vm2 }
  0xfb   : >> { %743 = vadd.xlane.f32.xlu0 %v742_v19  ;;  %v787_v31 = vld [vmem:[%s4096_s28] sm:$0xff]  ;;  %v788_v32 = vld [vmem:[%s4096_s28 + $0x8] sm:$0xff]  ;;  %v789_v37 = vld [vmem:[%s4096_s28 + $0x10] sm:$0xff]  ;;  %s4413_s29 = sld [smem:[#allocation6_spill]]  ;;  %s3913_s26 = smov 16  }
  0xfc   : >> { %v795_v33 = vld [vmem:[%s4096_s28 + $0x40] sm:$0xff]  ;;  %v3622_v34 = vpack.c.bf16 %v788_v32, %v787_v31  ;;  %v796_v35 = vld [vmem:[%s4096_s28 + $0x48] sm:$0xff]  ;;  %v790_v38 = vld [vmem:[%s4096_s28 + $0x18] sm:$0xff]  ;;  %s3914_s27 = smov 8   ;;  %s2633_s22 = scalar_lea.vmem %s4391_s9, %s3911_s25 }
  0xfd   : >> { %v3638_v36 = vpack.c.bf16 %v796_v35, %v795_v33  ;;  %v797_v39 = vld [vmem:[%s4096_s28 + $0x50] sm:$0xff]  ;;  %v3626_v40 = vpack.c.bf16 %v790_v38, %v789_v37  ;;  %v798_v41 = vld [vmem:[%s4096_s28 + $0x58] sm:$0xff]  ;;  %v791_v43 = vld [vmem:[%s4096_s28 + $0x20] sm:$0xff]  ;;  %s3192_s21 = sshll.u32 %s3911_s25, 6 }
  0xfe   : >> { %3623 = vmatprep.subr.bf16.mxu1 %v3622_v34  ;;  %v3642_v42 = vpack.c.bf16 %v798_v41, %v797_v39  ;;  %v792_v44 = vld [vmem:[%s4096_s28 + $0x28] sm:$0xff]  ;;  %v1110_v45 = vld [vmem:[%s4109_s0] sm:$0xff]  ;;  %v793_v63 = vld [vmem:[%s4096_s28 + $0x30] sm:$0xff] }
  0xff   : >> { %746 = vadd.xlane.f32.xlu0 %v745_v20  ;;  %3639 = vmatprep.subr.bf16.mxu0 %v3638_v36  ;;  %v3630_v46 = vpack.c.bf16 %v792_v44, %v791_v43  ;;  %v1111_v47 = vld [vmem:[%s4109_s0 + $0x8] sm:$0xff]  ;;  %s737_s24 = scalar_lea.vmem %s4412_s23, %s3911_s25  ;;  %v794_v1 = vld [vmem:[%s4096_s28 + $0x38] sm:$0xff]  ;;  %v1112_v2 = vld [vmem:[%s4109_s0 + $0x10] sm:$0xff]  ;;  %s4156_s23 = scalar_lea.vmem %s4389_s7, %s4090_s3 }
 0x100   : >> { %3625 = vmatpush3.bf16.msra.mxu1 %v3622_v34  ;;  %3641 = vmatpush3.bf16.msra.mxu0 %v3638_v36  ;;  %v3654_v48 = vpack.c.bf16 %v1111_v47, %v1110_v45  ;;  %v3132_v56 = vld [vmem:[%s737_s24] ss:$0 sm:$0xff]  ;;  %v1113_v3 = vld [vmem:[%s4109_s0 + $0x18] sm:$0xff]  ;;  %v3634_v6 = vpack.c.bf16 %v794_v1, %v793_v63  ;;  %v800_v8 = vld [vmem:[%s4096_s28 + $0x68] sm:$0xff]  ;;  %s3183_s3 = sshll.u32 %s3911_s25, 5 }
 0x101   : >> { %3627 = vmatprep.subr.bf16.mxu1 %v3626_v40  ;;  %3643 = vmatprep.subr.bf16.mxu0 %v3642_v42  ;;  %s739_s30 = scalar_lea.vmem %s4413_s29, %s3911_s25  ;;  %v799_v5 = vld [vmem:[%s4096_s28 + $0x60] sm:$0xff]  ;;  %v3658_v7 = vpack.c.bf16 %v1113_v3, %v1112_v2  ;;  %v1119_v10 = vld [vmem:[%s4109_s0 + $0x48] sm:$0xff]  ;;  %v801_v13 = vld [vmem:[%s4096_s28 + $0x70] sm:$0xff]  ;;  %s2545_s24 = scalar_lea.vmem %s4390_s8, %s3183_s3 }
 0x102   : >> { %v3133_v58 = vld [vmem:[%s739_s30] ss:$0 sm:$0xff]  ;;  %v3646_v11 = vpack.c.bf16 %v800_v8, %v799_v5  ;;  %v802_v14 = vld [vmem:[%s4096_s28 + $0x78] sm:$0xff]  ;;  %v1120_v15 = vld [vmem:[%s4109_s0 + $0x50] sm:$0xff]  ;;  %s3915_s29 = smov 24   ;;  %s2645_s30 = scalar_lea.vmem %s4393_s11, %s3911_s25 }
 0x103   : >> { %v1118_v9 = vld [vmem:[%s4109_s0 + $0x40] sm:$0xff]  ;;  %v1121_v17 = vld [vmem:[%s4109_s0 + $0x58] sm:$0xff]  ;;  %v3650_v19 = vpack.c.bf16 %v802_v14, %v801_v13  ;;  %v1123_v33 = vld [vmem:[%s4109_s0 + $0x68] sm:$0xff]  ;;  %s2794_s28 = scalar_lea.vmem %s4396_s14, %s3192_s21 }
 0x104   : >> { %3629 = vmatpush3.bf16.msra.mxu1 %v3626_v40  ;;  %3645 = vmatpush3.bf16.msra.mxu0 %v3642_v42  ;;  %v3670_v12 = vpack.c.bf16 %v1119_v10, %v1118_v9  ;;  %v3674_v20 = vpack.c.bf16 %v1121_v17, %v1120_v15  ;;  %v1122_v32 = vld [vmem:[%s4109_s0 + $0x60] sm:$0xff]  ;;  %v1436_v36 = vld [vmem:[%s4156_s23 + $0x48] sm:$0xff]  ;;  %v1124_v39 = vld [vmem:[%s4109_s0 + $0x70] sm:$0xff] }
 0x105   : >> { %3631 = vmatprep.subr.bf16.mxu1 %v3630_v46  ;;  %3655 = vmatprep.subr.bf16.mxu0 %v3654_v48  ;;  %v1435_v35 = vld [vmem:[%s4156_s23 + $0x40] sm:$0xff]  ;;  %v3678_v37 = vpack.c.bf16 %v1123_v33, %v1122_v32  ;;  %v1125_v40 = vld [vmem:[%s4109_s0 + $0x78] sm:$0xff]  ;;  %v1437_v41 = vld [vmem:[%s4156_s23 + $0x50] sm:$0xff] }
 0x106   : >> { %v3702_v38 = vpack.c.bf16 %v1436_v36, %v1435_v35  ;;  %v1438_v42 = vld [vmem:[%s4156_s23 + $0x58] sm:$0xff]  ;;  %v3682_v43 = vpack.c.bf16 %v1125_v40, %v1124_v39  ;;  %v1431_v44 = vld [vmem:[%s4156_s23 + $0x20] sm:$0xff]  ;;  %v1432_v45 = vld [vmem:[%s4156_s23 + $0x28] sm:$0xff] }
 0x107   : >> { %v3694_v47 = vpack.c.bf16 %v1432_v45, %v1431_v44 }
 0x188   : >> { %v744_v21 = vpop.xlane.xlu0 %743 }
 0x189   : >> { %v749_v22 = vmul.f32 0.03125, %v744_v21  ;;  %v1114_v21 = vld [vmem:[%s4109_s0 + $0x20] sm:$0xff] }
 0x18b   : >> { %v751_v23 = vsub.f32 %v3907_v18, %v749_v22  ;;  %v1115_v22 = vld [vmem:[%s4109_s0 + $0x28] sm:$0xff] }
 0x18c   : >> { %v747_v24 = vpop.xlane.xlu0 %746 }
 0x18d   : >> { %v750_v25 = vmul.f32 0.03125, %v747_v24  ;;  %v753_v26 = vmul.f32 %v751_v23, %v751_v23  ;;  %v1428_v24 = vld [vmem:[%s4156_s23 + $0x8] sm:$0xff] }
 0x18f   : >> { %v752_v27 = vsub.f32 %v3903_v16, %v750_v25  ;;  %v755_v28 = vsel %vm741_vm1, %v753_v26, 0.0  ;;  %v3662_v25 = vpack.c.bf16 %v1115_v22, %v1114_v21 }
 0x190   : >> { %756 = vadd.xlane.f32.xlu1 %v755_v28  ;;  %v1117_v28 = vld [vmem:[%s4109_s0 + $0x38] sm:$0xff] }
 0x191   : >> { %v754_v29 = vmul.f32 %v752_v27, %v752_v27 }
 0x193   : >> { %v758_v30 = vsel %vm741_vm1, %v754_v29, 0.0  ;;  %v1429_v29 = vld [vmem:[%s4156_s23 + $0x10] sm:$0xff] }
 0x194   : >> { %759 = vadd.xlane.f32.xlu1 %v758_v30  ;;  %v1430_v30 = vld [vmem:[%s4156_s23 + $0x18] sm:$0xff] }
 0x195   : >> { %v3690_v34 = vpack.c.bf16 %v1430_v30, %v1429_v29 }
 0x21d   : >> { %v757_v49 = vpop.xlane.xlu1 %756 }
 0x21e   : >> { %v761_v50 = vmul.f32 0.03125, %v757_v49  ;;  %v1434_v49 = vld [vmem:[%s4156_s23 + $0x38] sm:$0xff] }
 0x220   : >> { %v763_v51 = vadd.f32 1e-05, %v761_v50 }
 0x221   : >> { %v760_v52 = vpop.xlane.xlu1 %759 }
 0x222   : >> { %3833 = vrsqrt.f32 %v763_v51  ;;  %v762_v53 = vmul.f32 0.03125, %v760_v52  ;;  %v1439_v51 = vld [vmem:[%s4156_s23 + $0x60] sm:$0xff]  ;;  %v1440_v52 = vld [vmem:[%s4156_s23 + $0x68] sm:$0xff] }
 0x224   : >> { %v764_v54 = vadd.f32 1e-05, %v762_v53  ;;  %v3710_v53 = vpack.c.bf16 %v1440_v52, %v1439_v51 }
 0x226   : >> { %3835 = vrsqrt.f32 %v764_v54  ;;  %v1441_v54 = vld [vmem:[%s4156_s23 + $0x70] sm:$0xff] }
 0x22c   : >> { %v3834_v55 = vpop.eup %3833 }
 0x22d   : >> { %v767_v57 = vmul.f32 %v3834_v55, %v751_v23  ;;  %v1427_v23 = vld [vmem:[%s4156_s23] sm:$0xff]  ;;  %v1442_v55 = vld [vmem:[%s4156_s23 + $0x78] sm:$0xff] }
 0x22e   : >> { %v3686_v26 = vpack.c.bf16 %v1428_v24, %v1427_v23 }
 0x22f   : >> { %v775_v59 = vmul.f32 %v3132_v56, %v767_v57 }
 0x230   : >> { %v3836_v60 = vpop.eup %3835 }
 0x231   : >> { %v4124_v61 = vadd.f32 %v3133_v58, %v775_v59  ;;  %v768_v62 = vmul.f32 %v3836_v60, %v752_v27  ;;  %v1116_v27 = vld [vmem:[%s4109_s0 + $0x30] sm:$0xff]  ;;  %s2689_s0 = scalar_lea.vmem %s4394_s12, %s3183_s3 }
 0x232   : >> { %v3666_v31 = vpack.c.bf16 %v1117_v28, %v1116_v27 }
 0x233   : >> { %v776_v0 = vmul.f32 %v3132_v56, %v768_v62  ;;  %3374 = vmatprep.mubr.msk.f32.mxu1 %vm741_vm1, %v4124_v61  ;;  %3396 = vmatprep.mubr.msk.f32.mxu0 %vm741_vm1, %v4124_v61  ;;  %v3714_v56 = vpack.c.bf16 %v1442_v55, %v1441_v54 }
 0x235   : >> { %v4134_v4 = vadd.f32 %v3133_v58, %v776_v0 }
 0x237   : >> { %3375 = vmatmul.mubr.msk.f32.vlgmr.msra.gmra.mrb[0].mxu1 %vm741_vm1, %v4134_v4  ;;  %3397 = vmatmul.mubr.msk.f32.vlgmr.msra.gmra.mrb[0].mxu0 %vm741_vm1, %v4134_v4 }
 0x238   : >> { %3633 = vmatpush3.bf16.msra.mxu1 %v3630_v46  ;;  %3657 = vmatpush3.bf16.msra.mxu0 %v3654_v48  ;;  %v3706_v46 = vpack.c.bf16 %v1438_v42, %v1437_v41  ;;  %v1433_v48 = vld [vmem:[%s4156_s23 + $0x30] sm:$0xff] }
 0x239   : >> { %3385 = vmatprep.mubr.msk.f32.mxu1 %vm741_vm1, %v4124_v61  ;;  %3418 = vmatprep.mubr.msk.f32.mxu0 %vm741_vm1, %v4124_v61  ;;  %v3698_v50 = vpack.c.bf16 %v1434_v49, %v1433_v48 }
 0x23a   : >> { %3635 = vmatprep.subr.bf16.mxu1 %v3634_v6  ;;  %3659 = vmatprep.subr.bf16.mxu0 %v3658_v7 }
 0x23c   : >> { %3637 = vmatpush3.bf16.msra.mxu1 %v3634_v6  ;;  %3661 = vmatpush3.bf16.msra.mxu0 %v3658_v7 }
 0x23d   : >> { %3647 = vmatprep.subr.bf16.mxu1 %v3646_v11  ;;  %3671 = vmatprep.subr.bf16.mxu0 %v3670_v12 }
 0x23f   : >> { %3386 = vmatmul.mubr.msk.f32.vlgmr.msra.gmra.mrb[2].mxu1 %vm741_vm1, %v4134_v4  ;;  %3419 = vmatmul.mubr.msk.f32.vlgmr.msra.gmra.mrb[2].mxu0 %vm741_vm1, %v4134_v4 }
 0x240   : >> { %3649 = vmatpush3.bf16.msra.mxu1 %v3646_v11  ;;  %3407 = vmatprep.mubr.msk.f32.mxu1 %vm741_vm1, %v4124_v61 }
 0x241   : >> { %3673 = vmatpush3.bf16.msra.mxu0 %v3670_v12  ;;  %3440 = vmatprep.mubr.msk.f32.mxu0 %vm741_vm1, %v4124_v61 }
 0x242   : >> { %3651 = vmatprep.subr.bf16.mxu1 %v3650_v19  ;;  %3675 = vmatprep.subr.bf16.mxu0 %v3674_v20 }
 0x244   : >> { %3653 = vmatpush3.bf16.msra.mxu1 %v3650_v19 }
 0x245   : >> { %3677 = vmatpush3.bf16.msra.mxu0 %v3674_v20  ;;  %3663 = vmatprep.subr.bf16.mxu1 %v3662_v25 }
 0x246   : >> { %3687 = vmatprep.subr.bf16.mxu0 %v3686_v26 }
 0x247   : >> { %3408 = vmatmul.mubr.msk.f32.vlgmr.msra.gmra.mrb[4].mxu1 %vm741_vm1, %v4134_v4 }
 0x248   : >> { %3441 = vmatmul.mubr.msk.f32.vlgmr.msra.gmra.mrb[4].mxu0 %vm741_vm1, %v4134_v4  ;;  %3665 = vmatpush3.bf16.msra.mxu1 %v3662_v25 }
 0x249   : >> { %3429 = vmatprep.mubr.msk.f32.mxu1 %vm741_vm1, %v4124_v61  ;;  %3689 = vmatpush3.bf16.msra.mxu0 %v3686_v26 }
 0x24a   : >> { %3462 = vmatprep.mubr.msk.f32.mxu0 %vm741_vm1, %v4124_v61  ;;  %3667 = vmatprep.subr.bf16.mxu1 %v3666_v31 }
 0x24b   : >> { %3691 = vmatprep.subr.bf16.mxu0 %v3690_v34 }
 0x24c   : >> { %3669 = vmatpush3.bf16.msra.mxu1 %v3666_v31 }
 0x24d   : >> { %3693 = vmatpush3.bf16.msra.mxu0 %v3690_v34  ;;  %3679 = vmatprep.subr.bf16.mxu1 %v3678_v37 }
 0x24e   : >> { %3703 = vmatprep.subr.bf16.mxu0 %v3702_v38 }
 0x24f   : >> { %3430 = vmatmul.mubr.msk.f32.vlgmr.msra.gmra.mrb[6].mxu1 %vm741_vm1, %v4134_v4 }
 0x250   : >> { %3463 = vmatmul.mubr.msk.f32.vlgmr.msra.gmra.mrb[6].mxu0 %vm741_vm1, %v4134_v4  ;;  %3681 = vmatpush3.bf16.msra.mxu1 %v3678_v37 }
 0x251   : >> { %3451 = vmatprep.mubr.msk.f32.mxu1 %vm741_vm1, %v4124_v61  ;;  %3705 = vmatpush3.bf16.msra.mxu0 %v3702_v38 }
 0x252   : >> { %3484 = vmatprep.mubr.msk.f32.mxu0 %vm741_vm1, %v4124_v61  ;;  %3683 = vmatprep.subr.bf16.mxu1 %v3682_v43 }
 0x253   : >> { %3707 = vmatprep.subr.bf16.mxu0 %v3706_v46 }
 0x254   : >> { %3685 = vmatpush3.bf16.msra.mxu1 %v3682_v43 }
 0x255   : >> { %3709 = vmatpush3.bf16.msra.mxu0 %v3706_v46  ;;  %3695 = vmatprep.subr.bf16.mxu1 %v3694_v47 }
 0x257   : >> { %3452 = vmatmul.mubr.msk.f32.vlgmr.msra.gmra.mrb[8].mxu1 %vm741_vm1, %v4134_v4 }
 0x258   : >> { %3485 = vmatmul.mubr.msk.f32.vlgmr.msra.gmra.mrb[8].mxu0 %vm741_vm1, %v4134_v4  ;;  %3697 = vmatpush3.bf16.msra.mxu1 %v3694_v47 }
 0x259   : >> { %3473 = vmatprep.mubr.msk.f32.mxu1 %vm741_vm1, %v4124_v61  ;;  %3699 = vmatprep.subr.bf16.mxu1 %v3698_v50 }
 0x25c   : >> { %3701 = vmatpush3.bf16.msra.mxu1 %v3698_v50 }
 0x25d   : >> { %3711 = vmatprep.subr.bf16.mxu1 %v3710_v53 }
 0x25f   : >> { %3474 = vmatmul.mubr.msk.f32.vlgmr.msra.gmra.mrb[10].mxu1 %vm741_vm1, %v4134_v4 }
 0x260   : >> { %3713 = vmatpush3.bf16.msra.mxu1 %v3710_v53  ;;  %3495 = vmatprep.mubr.msk.f32.mxu1 %vm741_vm1, %v4124_v61 }
 0x261   : >> { %3715 = vmatprep.subr.bf16.mxu1 %v3714_v56 }
 0x264   : >> { %3717 = vmatpush3.bf16.msra.mxu1 %v3714_v56 }
 0x267   : >> { %3496 = vmatmul.mubr.msk.f32.vlgmr.msra.gmra.mrb[12].mxu1 %vm741_vm1, %v4134_v4 }
 0x30a   : >> { %v3376_v57 = vpop.f32.mrb[0].mxu1  ;;  %v3398_v58 = vpop.f32.mrb[0].mxu0 }
 0x30b   : >> { %v875_v59 = vpop.f32.mrb[1].mxu1  ;;  %v1025_v60 = vpop.f32.mrb[1].mxu0 }
 0x30c   : >> { %3502 = vmatprep.mubr.msk.f32.mxu0 %vm1743_vm2, %v875_v59 }
 0x312   : >> { %v3387_v62 = vpop.f32.mrb[2].mxu1  ;;  %v3420_v63 = vpop.f32.mrb[2].mxu0 }
 0x313   : >> { %v950_v0 = vpop.f32.mrb[3].mxu1  ;;  %v1192_v1 = vpop.f32.mrb[3].mxu0 }
 0x314   : >> { %v3718_v2 = vpack.c.bf16 %v3420_v63, %v1192_v1  ;;  %3509 = vmatprep.mubr.msk.f32.mxu1 %vm1743_vm2, %v950_v0 }
 0x316   : >> { %3720 = vmatprep.subr.msk.bf16.mxu0 %vm4221_vm3, %v3718_v2 }
 0x317   : >> { %3723 = vmatpush3.bf16.xpose.msk.msra.mxu0 %vm4221_vm3, %v3718_v2 }
 0x31a   : >> { %v3409_v3 = vpop.f32.mrb[4].mxu1 }
 0x31b   : >> { %v3442_v4 = vpop.f32.mrb[4].mxu0  ;;  %v1100_v5 = vpop.f32.mrb[5].mxu1 }
 0x31c   : >> { %v1342_v6 = vpop.f32.mrb[5].mxu0 }
 0x31d   : >> { %v3730_v7 = vpack.c.bf16 %v3442_v4, %v1342_v6 }
 0x31e   : >> { %3503 = vmatmul.mubr.msk.f32.vlgmr.msra.gmra.mrb[10].mxu0 %vm1743_vm2, %v3376_v57 }
 0x31f   : >> { %3732 = vmatprep.subr.msk.bf16.mxu0 %vm4221_vm3, %v3730_v7  ;;  %3516 = vmatprep.mubr.msk.f32.mxu0 %vm1743_vm2, %v1025_v60 }
 0x320   : >> { %3735 = vmatpush3.bf16.xpose.msk.msra.mxu0 %vm4221_vm3, %v3730_v7 }
 0x322   : >> { %v3431_v8 = vpop.f32.mrb[6].mxu1 }
 0x323   : >> { %v3464_v9 = vpop.f32.mrb[6].mxu0  ;;  %v1267_v10 = vpop.f32.mrb[7].mxu1 }
 0x324   : >> { %v3724_v11 = vpack.c.bf16 %v3431_v8, %v1267_v10  ;;  %v1509_v12 = vpop.f32.mrb[7].mxu0 }
 0x325   : >> { %v3742_v13 = vpack.c.bf16 %v3464_v9, %v1509_v12 }
 0x326   : >> { %3726 = vmatprep.subr.msk.bf16.mxu1 %vm4221_vm3, %v3724_v11 }
 0x327   : >> { %3517 = vmatmul.mubr.msk.f32.vlgmr.msra.gmra.mrb[12].mxu0 %vm1743_vm2, %v3398_v58  ;;  %3743 = vmatprep.subr.bf16.mxu0 %v3742_v13 }
 0x328   : >> { %3729 = vmatpush3.bf16.xpose.msk.msra.mxu1 %vm4221_vm3, %v3724_v11  ;;  %3745 = vmatpush3.bf16.msra.mxu0 %v3742_v13 }
 0x32a   : >> { %v3453_v14 = vpop.f32.mrb[8].mxu1 }
 0x32b   : >> { %v3486_v15 = vpop.f32.mrb[8].mxu0  ;;  %v1417_v17 = vpop.f32.mrb[9].mxu1 }
 0x32c   : >> { %v3736_v19 = vpack.c.bf16 %v3453_v14, %v1417_v17  ;;  %v1659_v20 = vpop.f32.mrb[9].mxu0 }
 0x32d   : >> { %v4241_v21 = vpack.c.bf16 %v3486_v15, %v1659_v20 }
 0x32e   : >> { %3738 = vmatprep.subr.msk.bf16.mxu1 %vm4221_vm3, %v3736_v19 }
 0x32f   : >> { %3510 = vmatmul.mubr.msk.f32.vlgmr.msra.gmra.mrb[14].mxu1 %vm1743_vm2, %v3387_v62  ;;  %3751 = vmatprep.subr.bf16.mxu0 %v4241_v21 }
 0x330   : >> { %3741 = vmatpush3.bf16.xpose.msk.msra.mxu1 %vm4221_vm3, %v3736_v19  ;;  %3523 = vmatprep.mubr.msk.f32.mxu1 %vm1743_vm2, %v1100_v5 }
 0x332   : >> { %v3475_v22 = vpop.f32.mrb[10].mxu1 }
 0x333   : >> { %v1584_v23 = vpop.f32.mrb[11].mxu1 }
 0x334   : >> { %v3746_v24 = vpack.c.bf16 %v3475_v22, %v1584_v23 }
 0x336   : >> { %3747 = vmatprep.subr.bf16.mxu1 %v3746_v24 }
 0x337   : >> { %3524 = vmatmul.mubr.msk.f32.vlgmr.msra.gmra.mrb[16].mxu1 %vm1743_vm2, %v3409_v3 }
 0x338   : >> { %3749 = vmatpush3.bf16.msra.mxu1 %v3746_v24 }
 0x33a   : >> { %v3497_v25 = vpop.f32.mrb[12].mxu1 }
 0x33b   : >> { %v1734_v26 = vpop.f32.mrb[13].mxu1 }
 0x33c   : >> { %v4251_v27 = vpack.c.bf16 %v3497_v25, %v1734_v26 }
 0x33e   : >> { %3755 = vmatprep.subr.bf16.mxu1 %v4251_v27 }
 0x3f1   : >> { %v3504_v28 = vpop.f32.mrb[10].mxu0 }
 0x3f2   : >> { %v2093_v29 = vmul.f32 0.35355338, %v3504_v28  ;;  %v1822_v30 = vpop.f32.mrb[11].mxu0 }
 0x3f3   : >> { %v2092_v31 = vmul.f32 0.35355338, %v1822_v30 }
 0x3f4   : >> { %v2104_v32 = vsel %vm2100_vm4, %v2093_v29, -inf }
 0x3f5   : >> { %2105 = vmax.xlane.f32.xlu1 %v2104_v32  ;;  %v2101_v33 = vsel %vm2100_vm4, %v2092_v31, -inf }
 0x3f6   : >> { %2102 = vmax.xlane.f32.xlu0 %v2101_v33 }
 0x3fa   : >> { %v3518_v34 = vpop.f32.mrb[12].mxu0 }
 0x3fb   : >> { %v2097_v35 = vmul.f32 0.35355338, %v3518_v34  ;;  %v1996_v36 = vpop.f32.mrb[13].mxu0 }
 0x3fc   : >> { %v2096_v37 = vmul.f32 0.35355338, %v1996_v36 }
 0x3fd   : >> { %v2116_v38 = vsel %vm2100_vm4, %v2097_v35, -inf }
 0x3fe   : >> { %2117 = vmax.xlane.f32.xlu1 %v2116_v38  ;;  %v2113_v39 = vsel %vm2100_vm4, %v2096_v37, -inf }
 0x3ff   : >> { %2114 = vmax.xlane.f32.xlu0 %v2113_v39 }
 0x402   : >> { %v3511_v40 = vpop.f32.mrb[14].mxu1 }
 0x403   : >> { %v2095_v41 = vmul.f32 0.35355338, %v3511_v40  ;;  %v1909_v42 = vpop.f32.mrb[15].mxu1 }
 0x404   : >> { %v2094_v43 = vmul.f32 0.35355338, %v1909_v42 }
 0x405   : >> { %v2110_v44 = vsel %vm2100_vm4, %v2095_v41, -inf }
 0x406   : >> { %2111 = vmax.xlane.f32.xlu1 %v2110_v44  ;;  %v2107_v45 = vsel %vm2100_vm4, %v2094_v43, -inf }
 0x407   : >> { %2108 = vmax.xlane.f32.xlu0 %v2107_v45 }
 0x40a   : >> { %v3525_v46 = vpop.f32.mrb[16].mxu1 }
 0x40b   : >> { %v2099_v47 = vmul.f32 0.35355338, %v3525_v46  ;;  %v2083_v48 = vpop.f32.mrb[17].mxu1 }
 0x40c   : >> { %v2098_v49 = vmul.f32 0.35355338, %v2083_v48 }
 0x40d   : >> { %v2122_v50 = vsel %vm2100_vm4, %v2099_v47, -inf }
 0x40e   : >> { %2123 = vmax.xlane.f32.xlu1 %v2122_v50  ;;  %v2119_v51 = vsel %vm2100_vm4, %v2098_v49, -inf }
 0x40f   : >> { %2120 = vmax.xlane.f32.xlu0 %v2119_v51 }
 0x482   : >> { %v2106_v52 = vpop.xlane.xlu1 %2105 }
 0x483   : >> { %v2126_v53 = vsub.f32 %v2093_v29, %v2106_v52  ;;  %v2103_v54 = vpop.xlane.xlu0 %2102 }
 0x484   : >> { %v2125_v55 = vsub.f32 %v2092_v31, %v2103_v54 }
 0x485   : >> { %v2135_v56 = vmul.f32 1.442695, %v2126_v53 }
 0x486   : >> { %v2133_v57 = vmul.f32 1.442695, %v2125_v55 }
 0x487   : >> { %3837 = vpow2.f32 %v2135_v56 }
 0x488   : >> { %3839 = vpow2.f32 %v2133_v57  ;;  %v2546_v57 = vld [vmem:[%s2545_s24] sm:$0xff] }
 0x48b   : >> { %v2118_v58 = vpop.xlane.xlu1 %2117 }
 0x48c   : >> { %v2130_v59 = vsub.f32 %v2097_v35, %v2118_v58  ;;  %v2115_v60 = vpop.xlane.xlu0 %2114  ;;  %v2547_v58 = vld [vmem:[%s2545_s24 + $0x8] sm:$0xff] }
 0x48d   : >> { %v2129_v62 = vsub.f32 %v2096_v37, %v2115_v60  ;;  %v2549_v60 = vld [vmem:[%s2545_s24 + $0x18] sm:$0xff] }
 0x48e   : >> { %v2143_v63 = vmul.f32 1.442695, %v2130_v59  ;;  %v2548_v59 = vld [vmem:[%s2545_s24 + $0x10] sm:$0xff]  ;;  %s2694_s24 = scalar_lea.vmem %s4395_s13, %s3911_s25 }
 0x48f   : >> { %v2141_v0 = vmul.f32 1.442695, %v2129_v62  ;;  %v3762_v62 = vpack.c.bf16 %v2549_v60, %v2548_v59  ;;  %v2796_v59 = vld [vmem:[%s2794_s28 + $0x8] sm:$0xff]  ;;  %v2797_v60 = vld [vmem:[%s2794_s28 + $0x10] sm:$0xff] }
 0x490   : >> { %3841 = vpow2.f32 %v2143_v63 }
 0x491   : >> { %v3838_v1 = vpop.eup %3837  ;;  %3843 = vpow2.f32 %v2141_v0 }
 0x492   : >> { %v3840_v61 = vpop.eup %3839  ;;  %v2152_v2 = vsel %vm2100_vm4, %v3838_v1, 0.0 }
 0x493   : >> { %v2112_v3 = vpop.xlane.xlu1 %2111  ;;  %2153 = vadd.xlane.f32.xlu1 %v2152_v2  ;;  %v2149_v4 = vsel %vm2100_vm4, %v3840_v61, 0.0 }
 0x494   : >> { %v2128_v5 = vsub.f32 %v2095_v41, %v2112_v3  ;;  %v2109_v6 = vpop.xlane.xlu0 %2108  ;;  %2150 = vadd.xlane.f32.xlu0 %v2149_v4 }
 0x495   : >> { %v2127_v7 = vsub.f32 %v2094_v43, %v2109_v6 }
 0x496   : >> { %v2139_v8 = vmul.f32 1.442695, %v2128_v5 }
 0x497   : >> { %v2137_v9 = vmul.f32 1.442695, %v2127_v7 }
 0x498   : >> { %3845 = vpow2.f32 %v2139_v8 }
 0x499   : >> { %3847 = vpow2.f32 %v2137_v9 }
 0x49a   : >> { %v3842_v10 = vpop.eup %3841 }
 0x49b   : >> { %v3844_v11 = vpop.eup %3843  ;;  %v2124_v12 = vpop.xlane.xlu1 %2123  ;;  %v2164_v13 = vsel %vm2100_vm4, %v3842_v10, 0.0 }
 0x49c   : >> { %v2132_v14 = vsub.f32 %v2099_v47, %v2124_v12  ;;  %2165 = vadd.xlane.f32.xlu1 %v2164_v13  ;;  %v2121_v15 = vpop.xlane.xlu0 %2120  ;;  %v2161_v17 = vsel %vm2100_vm4, %v3844_v11, 0.0 }
 0x49d   : >> { %v2131_v19 = vsub.f32 %v2098_v49, %v2121_v15  ;;  %2162 = vadd.xlane.f32.xlu0 %v2161_v17 }
 0x49e   : >> { %v2147_v20 = vmul.f32 1.442695, %v2132_v14 }
 0x49f   : >> { %v2145_v22 = vmul.f32 1.442695, %v2131_v19  ;;  %v3186_v19 = vld [vmem:[%s2633_s22] ss:$0 sm:$0xff] }
 0x4a0   : >> { %3849 = vpow2.f32 %v2147_v20 }
 0x4a1   : >> { %3851 = vpow2.f32 %v2145_v22 }
 0x4a2   : >> { %v3846_v23 = vpop.eup %3845 }
 0x4a3   : >> { %v3848_v24 = vpop.eup %3847  ;;  %v2158_v25 = vsel %vm2100_vm4, %v3846_v23, 0.0 }
 0x4a4   : >> { %2159 = vadd.xlane.f32.xlu1 %v2158_v25  ;;  %v2155_v26 = vsel %vm2100_vm4, %v3848_v24, 0.0 }
 0x4a5   : >> { %2156 = vadd.xlane.f32.xlu0 %v2155_v26 }
 0x4aa   : >> { %v3850_v28 = vpop.eup %3849 }
 0x4ab   : >> { %v3852_v29 = vpop.eup %3851  ;;  %v2170_v30 = vsel %vm2100_vm4, %v3850_v28, 0.0 }
 0x4ac   : >> { %2171 = vadd.xlane.f32.xlu1 %v2170_v30  ;;  %v2167_v31 = vsel %vm2100_vm4, %v3852_v29, 0.0 }
 0x4ad   : >> { %2168 = vadd.xlane.f32.xlu0 %v2167_v31 }
 0x520   : >> { %v2154_v32 = vpop.xlane.xlu1 %2153 }
 0x521   : >> { %3853 = vrcp.f32 %v2154_v32  ;;  %v2151_v33 = vpop.xlane.xlu0 %2150 }
 0x522   : >> { %3855 = vrcp.f32 %v2151_v33 }
 0x529   : >> { %v2166_v34 = vpop.xlane.xlu1 %2165 }
 0x52a   : >> { %3857 = vrcp.f32 %v2166_v34  ;;  %v2163_v35 = vpop.xlane.xlu0 %2162 }
 0x52b   : >> { %v3854_v36 = vpop.eup %3853  ;;  %3859 = vrcp.f32 %v2163_v35 }
 0x52c   : >> { %v3856_v37 = vpop.eup %3855  ;;  %v2182_v39 = vmul.f32 %v3854_v36, %v3838_v1 }
 0x52d   : >> { %v2181_v38 = vmul.f32 %v3856_v37, %v3840_v61  ;;  %v2690_v37 = vld [vmem:[%s2689_s0] sm:$0xff] }
 0x52f   : >> { %3530 = vmatprep.mubr.msk.f32.mxu0 %vm2100_vm4, %v2181_v38  ;;  %v2691_v38 = vld [vmem:[%s2689_s0 + $0x8] sm:$0xff] }
 0x530   : >> { %3531 = vmatmul.mubr.msk.f32.vlgmr.msra.gmra.mrb[14].mxu0 %vm2100_vm4, %v2182_v39  ;;  %v3766_v39 = vpack.c.bf16 %v2691_v38, %v2690_v37 }
 0x531   : >> { %v2160_v40 = vpop.xlane.xlu1 %2159  ;;  %3753 = vmatpush3.bf16.msra.mxu0 %v4241_v21 }
 0x532   : >> { %3861 = vrcp.f32 %v2160_v40  ;;  %v2157_v41 = vpop.xlane.xlu0 %2156  ;;  %v2692_v40 = vld [vmem:[%s2689_s0 + $0x10] sm:$0xff] }
 0x533   : >> { %3863 = vrcp.f32 %v2157_v41  ;;  %v2693_v41 = vld [vmem:[%s2689_s0 + $0x18] sm:$0xff] }
 0x534   : >> { %v3858_v42 = vpop.eup %3857 }
 0x535   : >> { %v3860_v43 = vpop.eup %3859  ;;  %v2186_v45 = vmul.f32 %v3858_v42, %v3842_v10  ;;  %v3770_v42 = vpack.c.bf16 %v2693_v41, %v2692_v40 }
 0x536   : >> { %v2185_v44 = vmul.f32 %v3860_v43, %v3844_v11 }
 0x538   : >> { %3544 = vmatprep.mubr.msk.f32.mxu0 %vm2100_vm4, %v2185_v44 }
 0x539   : >> { %v2172_v46 = vpop.xlane.xlu1 %2171  ;;  %3545 = vmatmul.mubr.msk.f32.vlgmr.msra.gmra.mrb[16].mxu0 %vm2100_vm4, %v2186_v45 }
 0x53a   : >> { %3865 = vrcp.f32 %v2172_v46  ;;  %v2169_v47 = vpop.xlane.xlu0 %2168 }
 0x53b   : >> { %3867 = vrcp.f32 %v2169_v47 }
 0x53c   : >> { %v3862_v48 = vpop.eup %3861 }
 0x53d   : >> { %v3864_v49 = vpop.eup %3863  ;;  %v2184_v50 = vmul.f32 %v3862_v48, %v3846_v23 }
 0x53e   : >> { %v2183_v21 = vmul.f32 %v3864_v49, %v3848_v24 }
 0x540   : >> { %3537 = vmatprep.mubr.msk.f32.mxu1 %vm2100_vm4, %v2183_v21 }
 0x541   : >> { %3538 = vmatmul.mubr.msk.f32.vlgmr.msra.gmra.mrb[18].mxu1 %vm2100_vm4, %v2184_v50 }
 0x542   : >> { %3757 = vmatpush3.bf16.msra.mxu1 %v4251_v27  ;;  %v3758_v27 = vpack.c.bf16 %v2547_v58, %v2546_v57  ;;  %v2795_v58 = vld [vmem:[%s2794_s28] sm:$0xff] }
 0x543   : >> { %3767 = vmatprep.subr.bf16.mxu1 %v3766_v39 }
 0x544   : >> { %v3866_v51 = vpop.eup %3865  ;;  %3759 = vmatprep.subr.bf16.mxu0 %v3758_v27 }
 0x545   : >> { %v3868_v52 = vpop.eup %3867  ;;  %v2188_v54 = vmul.f32 %v3866_v51, %v3850_v28  ;;  %3761 = vmatpush3.bf16.msra.mxu0 %v3758_v27  ;;  %v3188_v51 = vld [vmem:[%s2645_s30] ss:$0 sm:$0xff]  ;;  %v3774_v27 = vpack.c.bf16 %v2796_v59, %v2795_v58 }
 0x546   : >> { %v2187_v53 = vmul.f32 %v3868_v52, %v3852_v29  ;;  %3763 = vmatprep.subr.bf16.mxu0 %v3762_v62 }
 0x548   : >> { %3551 = vmatprep.mubr.msk.f32.mxu1 %vm2100_vm4, %v2187_v53 }
 0x549   : >> { %3552 = vmatmul.mubr.msk.f32.vlgmr.msra.gmra.mrb[20].mxu1 %vm2100_vm4, %v2188_v54  ;;  %3765 = vmatpush3.bf16.msra.mxu0 %v3762_v62  ;;  %v2798_v62 = vld [vmem:[%s2794_s28 + $0x18] sm:$0xff] }
 0x54a   : >> { %3769 = vmatpush3.bf16.msra.mxu1 %v3766_v39  ;;  %3775 = vmatprep.subr.bf16.mxu0 %v3774_v27 }
 0x54b   : >> { %3771 = vmatprep.subr.bf16.mxu1 %v3770_v42 }
 0x54e   : >> { %3773 = vmatpush3.bf16.msra.mxu1 %v3770_v42 }
 0x603   : >> { %v3532_v55 = vpop.f32.mrb[14].mxu0 }
 0x604   : >> { %v2261_v56 = vpop.f32.mrb[15].mxu0 }
 0x60c   : >> { %v3546_v63 = vpop.f32.mrb[16].mxu0 }
 0x60d   : >> { %2525 = vrot.lane.b32.xlu1 %v3546_v63, %s3913_s26  ;;  %v2423_v0 = vpop.f32.mrb[17].mxu0  ;;  %v3778_v63 = vpack.c.bf16 %v2798_v62, %v2797_v60 }
 0x611   : >> { %2523 = vrot.lane.b32.xlu1 %v2423_v0, %s3913_s26  ;;  %s2643_s26 = scalar_lea.vmem %s4392_s10, %s3911_s25  ;;  %v2799_v0 = vld [vmem:[%s2794_s28 + $0x20] sm:$0xff] }
 0x612   : >> { %v3187_v21 = vld [vmem:[%s2643_s26] ss:$0 sm:$0xff] }
 0x614   : >> { %v3539_v1 = vpop.f32.mrb[18].mxu1 }
 0x615   : >> { %2517 = vrot.lane.b32.xlu1 %v3539_v1, %s3914_s27  ;;  %v2342_v61 = vpop.f32.mrb[19].mxu1  ;;  %v2800_v1 = vld [vmem:[%s2794_s28 + $0x28] sm:$0xff] }
 0x616   : >> { %2515 = vrot.lane.b32.xlu0 %v2342_v61, %s3914_s27  ;;  %v3782_v61 = vpack.c.bf16 %v2800_v1, %v2799_v0 }
 0x61c   : >> { %v3553_v2 = vpop.f32.mrb[20].mxu1 }
 0x61d   : >> { %2533 = vrot.lane.b32.xlu1 %v3553_v2, %s3915_s29  ;;  %v2504_v3 = vpop.f32.mrb[21].mxu1  ;;  %v2801_v2 = vld [vmem:[%s2794_s28 + $0x30] sm:$0xff] }
 0x61e   : >> { %2531 = vrot.lane.b32.xlu0 %v2504_v3, %s3915_s29  ;;  %v2802_v3 = vld [vmem:[%s2794_s28 + $0x38] sm:$0xff]  ;;  %s2803_s29 = scalar_lea.vmem %s4397_s15, %s3911_s25  ;;  %s734_s25 = sadd.s32 1, %s3911_s25  }
 0x61f   : >> { %p731_p4 = scmp.ge.s32.totalorder %s734_s25, 2  }
 0x620   : > { %v2941_v42 = vld [vmem:[%s4400_s18 + $0x8] sm:$0xff] (%p731_p4)  ;;  %v3198_v62 = vld [vmem:[%s4401_s19] ss:$0 sm:$0xff] (%p731_p4) }
 0x67f   : >> { %v2526_v4 = vpop.permute.xlu1 %2525 }
 0x683   : >> { %v2524_v5 = vpop.permute.xlu1 %2523 }
 0x687   : >> { %v2518_v7 = vpop.permute.xlu1 %2517 }
 0x688   : >> { %v2516_v6 = vpop.permute.xlu0 %2515  ;;  %v2538_v9 = vsel %vm1743_vm2, %v3532_v55, %v2518_v7 }
 0x689   : >> { %v2537_v8 = vsel %vm1743_vm2, %v2261_v56, %v2516_v6  ;;  %v2540_v13 = vsel %vm2100_vm4, %v2538_v9, %v2526_v4  ;;  %v3786_v4 = vpack.c.bf16 %v2802_v3, %v2801_v2 }
 0x68a   : >> { %v2539_v11 = vsel %vm2100_vm4, %v2537_v8, %v2524_v5  ;;  %v3189_v5 = vld [vmem:[%s2694_s24] ss:$0 sm:$0xff] }
 0x68f   : >> { %v2534_v10 = vpop.permute.xlu1 %2533 }
 0x690   : >> { %v2532_v12 = vpop.permute.xlu0 %2531  ;;  %v2543_v15 = vsel %vm2541_vm5, %v2540_v13, %v2534_v10 }
 0x691   : >> { %v2542_v14 = vsel %vm2541_vm5, %v2539_v11, %v2532_v12 }
 0x692   : >> { %3562 = vmatprep.mubr.msk.f32.mxu0 %vm741_vm1, %v2542_v14 }
 0x693   : >> { %3563 = vmatmul.mubr.msk.f32.vlgmr.msra.gmra.mrb[18].mxu0 %vm741_vm1, %v2543_v15 }
 0x694   : >> { %3777 = vmatpush3.bf16.msra.mxu0 %v3774_v27 }
 0x695   : >> { %3779 = vmatprep.subr.bf16.mxu0 %v3778_v63 }
 0x698   : >> { %3781 = vmatpush3.bf16.msra.mxu0 %v3778_v63 }
 0x699   : >> { %3783 = vmatprep.subr.bf16.mxu0 %v3782_v61 }
 0x69c   : >> { %3785 = vmatpush3.bf16.msra.mxu0 %v3782_v61 }
 0x69d   : >> { %3787 = vmatprep.subr.bf16.mxu0 %v3786_v4 }
 0x6a0   : >> { %3789 = vmatpush3.bf16.msra.mxu0 %v3786_v4 }
 0x766   : >> { %v3564_v17 = vpop.f32.mrb[18].mxu0 }
 0x767   : >> { %v2632_v20 = vadd.f32 %v3903_v16, %v3564_v17  ;;  %v2622_v22 = vpop.f32.mrb[19].mxu0 }
 0x768   : >> { %v2631_v23 = vadd.f32 %v3907_v18, %v2622_v22 }
 0x769   : >> { %v4298_v24 = vadd.f32 %v3186_v19, %v2632_v20 }
 0x76a   : >> { %v4300_v25 = vadd.f32 %v3186_v19, %v2631_v23  ;;  %v3193_v23 = vld [vmem:[%s2803_s29] ss:$0 sm:$0xff] }
 0x76b   : >> { %v2650_v26 = vsel %vm741_vm1, %v4298_v24, 0.0 }
 0x76c   : >> { %2651 = vadd.xlane.f32.xlu1 %v2650_v26  ;;  %v2647_v28 = vsel %vm741_vm1, %v4300_v25, 0.0 }
 0x76d   : >> { %2648 = vadd.xlane.f32.xlu0 %v2647_v28 }
 0x7f9   : >> { %v2652_v29 = vpop.xlane.xlu1 %2651 }
 0x7fa   : >> { %v2654_v30 = vmul.f32 0.03125, %v2652_v29  ;;  %v2649_v31 = vpop.xlane.xlu0 %2648 }
 0x7fb   : >> { %v2653_v16 = vmul.f32 0.03125, %v2649_v31 }
 0x7fc   : >> { %v2656_v32 = vsub.f32 %v4298_v24, %v2654_v30 }
 0x7fd   : >> { %v2655_v18 = vsub.f32 %v4300_v25, %v2653_v16 }
 0x7fe   : >> { %v2658_v35 = vmul.f32 %v2656_v32, %v2656_v32 }
 0x7ff   : >> { %v2657_v33 = vmul.f32 %v2655_v18, %v2655_v18 }
 0x800   : >> { %v2662_v36 = vsel %vm741_vm1, %v2658_v35, 0.0 }
 0x801   : >> { %v2659_v34 = vsel %vm741_vm1, %v2657_v33, 0.0 }
 0x802   : >> { %2660 = vadd.xlane.f32.xlu0 %v2659_v34 }
 0x806   : >> { %2663 = vadd.xlane.f32.xlu0 %v2662_v36 }
 0x88f   : >> { %v2661_v43 = vpop.xlane.xlu0 %2660 }
 0x890   : >> { %v2665_v44 = vmul.f32 0.03125, %v2661_v43  ;;  %v2942_v43 = vld [vmem:[%s4400_s18 + $0x10] sm:$0xff] (%p731_p4) }
 0x892   : >> { %v2667_v45 = vadd.f32 1e-05, %v2665_v44 }
 0x893   : >> { %v2664_v46 = vpop.xlane.xlu0 %2663 }
 0x894   : >> { %3869 = vrsqrt.f32 %v2667_v45  ;;  %v2666_v47 = vmul.f32 0.03125, %v2664_v46  ;;  %v2943_v45 = vld [vmem:[%s4400_s18 + $0x18] sm:$0xff] (%p731_p4) }
 0x895   : > { %v3794_v46 = vpack.c.bf16 (%p731_p4), %v2943_v45, %v2942_v43 }
 0x896   : >> { %v2668_v48 = vadd.f32 1e-05, %v2666_v47 }
 0x898   : >> { %3871 = vrsqrt.f32 %v2668_v48 }
 0x89e   : >> { %v3870_v49 = vpop.eup %3869 }
 0x89f   : >> { %v2671_v50 = vmul.f32 %v3870_v49, %v2655_v18 }
 0x8a1   : >> { %v2679_v52 = vmul.f32 %v3187_v21, %v2671_v50 }
 0x8a2   : >> { %v3872_v53 = vpop.eup %3871 }
 0x8a3   : >> { %v2672_v54 = vmul.f32 %v3872_v53, %v2656_v32  ;;  %v2687_v55 = vadd.f32 %v3188_v51, %v2679_v52  ;;  %v3196_v53 = vld [vmem:[%s4398_s16] ss:$0 sm:$0xff] (%p731_p4) }
 0x8a5   : >> { %v2680_v56 = vmul.f32 %v3187_v21, %v2672_v54  ;;  %3573 = vmatprep.mubr.msk.f32.mxu1 %vm741_vm1, %v2687_v55  ;;  %v3197_v55 = vld [vmem:[%s4399_s17] ss:$0 sm:$0xff] (%p731_p4) }
 0x8a7   : >> { %v2688_v57 = vadd.f32 %v3188_v51, %v2680_v56 }
 0x8a9   : >> { %3574 = vmatmul.mubr.msk.f32.vlgmr.msra.gmra.mrb[22].mxu1 %vm741_vm1, %v2688_v57 }
 0x97c   : >> { %v3575_v6 = vpop.f32.mrb[22].mxu1 }
 0x97d   : >> { %v2780_v7 = vadd.f32 %v3575_v6, %v3189_v5  ;;  %v2774_v8 = vpop.f32.mrb[23].mxu1 }
 0x97e   : >> { %v2775_v9 = vadd.f32 %v3189_v5, %v2774_v8 }
 0x97f   : >> { %v2786_v10 = vmul.f32 0.70710677, %v2780_v7  ;;  %v2784_v19 = vmul.f32 0.5, %v2780_v7 }
 0x980   : >> { %v2785_v11 = vmul.f32 0.70710677, %v2775_v9  ;;  %v2783_v15 = vmul.f32 0.5, %v2775_v9 }
 0x981   : >> { %3873 = verf.f32 %v2786_v10 }
 0x982   : >> { %3875 = verf.f32 %v2785_v11 }
 0x98b   : >> { %v3874_v12 = vpop.eup %3873 }
 0x98c   : >> { %v3876_v13 = vpop.eup %3875  ;;  %v2790_v14 = vadd.f32 1.0, %v3874_v12 }
 0x98d   : >> { %v2789_v17 = vadd.f32 1.0, %v3876_v13 }
 0x98e   : >> { %v2792_v22 = vmul.f32 %v2790_v14, %v2784_v19 }
 0x98f   : >> { %v2791_v20 = vmul.f32 %v2789_v17, %v2783_v15 }
 0x991   : >> { %3592 = vmatprep.mubr.msk.f32.mxu0 %vm647_vm0, %v2791_v20 }
 0x992   : >> { %3593 = vmatmul.mubr.msk.f32.vlgmr.msra.gmra.mrb[20].mxu0 %vm647_vm0, %v2792_v22 }
 0xa65   : >> { %v3594_v26 = vpop.f32.mrb[20].mxu0  ;;  %733 = sbr.rel (!%p731_p4) target bundleno = 249 (0xf9), region = 150 }
 0xa66   : >> { %v2889_v28 = vadd.f32 %v3594_v26, %v3193_v23  ;;  %v2883_v29 = vpop.f32.mrb[21].mxu0 }
 0xa67   : >> { %v2884_v30 = vadd.f32 %v3193_v23, %v2883_v29 }
 0xa68   : >> { %v2893_v31 = vadd.f32 %v2889_v28, %v4298_v24  }
 0xa69   : >> { %v2892_v32 = vadd.f32 %v2884_v30, %v4300_v25  }
 0xa6a   : >> { %v4416_v16 = vmov %v2893_v31  ;;  %v2900_v33 = vsel (%p731_p4), %vm741_vm1, %v2893_v31, 0.0 }
 0xa6b   : >> { %v4417_v18 = vmov %v2892_v32  ;;  %v2940_v16 = vld [vmem:[%s4400_s18] sm:$0xff] (%p731_p4) }
 0xa6c   : > { %v2897_v18 = vsel %vm741_vm1, %v2892_v32, 0.0  ;;  %v3790_v44 = vpack.c.bf16 %v2941_v42, %v2940_v16 }
 0xa6d   : > { %2898 = vadd.xlane.f32.xlu0 %v2897_v18 }
 0xa6e   : > { %3791 = vmatprep.subr.bf16.mxu0 %v3790_v44 }
 0xa6f   : > { %3793 = vmatpush3.bf16.msra.mxu0 %v3790_v44 }
 0xa70   : > { %3795 = vmatprep.subr.bf16.mxu0 %v3794_v46 }
 0xa71   : > { %2901 = vadd.xlane.f32.xlu0 %v2900_v33 }
 0xa73   : > { %3797 = vmatpush3.bf16.msra.mxu0 %v3794_v46 }
 0xafa   : > { %v2899_v34 = vpop.xlane.xlu0 %2898 }
 0xafb   : > { %v2904_v24 = vmul.f32 0.03125, %v2899_v34 }
 0xafd   : > { %v2906_v35 = vsub.f32 %v2892_v32, %v2904_v24 }
 0xafe   : > { %v2902_v25 = vpop.xlane.xlu0 %2901 }
 0xaff   : > { %v2905_v36 = vmul.f32 0.03125, %v2902_v25  ;;  %v2908_v37 = vmul.f32 %v2906_v35, %v2906_v35 }
 0xb01   : > { %v2907_v38 = vsub.f32 %v2893_v31, %v2905_v36  ;;  %v2910_v39 = vsel %vm741_vm1, %v2908_v37, 0.0 }
 0xb02   : > { %2911 = vadd.xlane.f32.xlu1 %v2910_v39 }
 0xb03   : > { %v2909_v40 = vmul.f32 %v2907_v38, %v2907_v38 }
 0xb05   : > { %v2913_v41 = vsel %vm741_vm1, %v2909_v40, 0.0 }
 0xb06   : > { %2914 = vadd.xlane.f32.xlu1 %v2913_v41 }
 0xb8f   : > { %v2912_v47 = vpop.xlane.xlu1 %2911 }
 0xb90   : > { %v2916_v48 = vmul.f32 0.03125, %v2912_v47 }
 0xb92   : > { %v2918_v49 = vadd.f32 1e-05, %v2916_v48 }
 0xb93   : > { %v2915_v21 = vpop.xlane.xlu1 %2914 }
 0xb94   : > { %3877 = vrsqrt.f32 %v2918_v49  ;;  %v2917_v50 = vmul.f32 0.03125, %v2915_v21 }
 0xb96   : > { %v2919_v51 = vadd.f32 1e-05, %v2917_v50 }
 0xb98   : > { %3879 = vrsqrt.f32 %v2919_v51 }
 0xb9e   : > { %v3878_v52 = vpop.eup %3877 }
 0xb9f   : > { %v2922_v54 = vmul.f32 %v3878_v52, %v2906_v35 }
 0xba1   : > { %v2930_v56 = vmul.f32 %v3196_v53, %v2922_v54 }
 0xba2   : > { %v3880_v57 = vpop.eup %3879 }
 0xba3   : > { %v2923_v58 = vmul.f32 %v3880_v57, %v2907_v38  ;;  %v2938_v59 = vadd.f32 %v3197_v55, %v2930_v56 }
 0xba5   : > { %v2931_v27 = vmul.f32 %v3196_v53, %v2923_v58  ;;  %3603 = vmatprep.mubr.msk.f32.mxu0 %vm741_vm1, %v2938_v59 }
 0xba7   : > { %v2939_v60 = vadd.f32 %v3197_v55, %v2931_v27 }
 0xba9   : > { %3604 = vmatmul.mubr.msk.f32.vlgmr.msra.gmra.mrb[0].mxu0 %vm741_vm1, %v2939_v60 }
 0xc7c   : > { %v3605_v63 = vpop.f32.mrb[0].mxu0 }
 0xc7d   : > { %v3029_v0 = vadd.f32 %v3605_v63, %v3198_v62  ;;  %v3023_v1 = vpop.f32.mrb[1].mxu0 }
 0xc7e   : > { %v3024_v61 = vadd.f32 %v3198_v62, %v3023_v1 }
 0xc7f   : > { %3034 = vst.msk [vmem:[%s4053_s4 + $0x8] sm:$0xff] %vm2100_vm4, %v3029_v0 }
 0xc80   : > { %3033 = vst.msk [vmem:[%s4053_s4] sm:$0xff] %vm2100_vm4, %v3024_v61 }
 0xc81 PF: > { %s30_s1 = sadd.s32 1, %s3899_s1  }
 0xc82   : > { %p27_p5 = scmp.ge.s32.totalorder %s30_s1, 4  }
 0xc84   :  { %29 = sbr.rel (!%p27_p5) target bundleno = 6 (0x6), region = 161 }

</bundles_post_ra>
